<compile_context>
chip_gen: v7x
topology: tpu7x:2x2x1
jax: 0.10.0
libtpu: 0.0.40
codegen_flags: <defaults>
</compile_context>

<pallas_src>
import functools

import jax
import jax.numpy as jnp
from jax.experimental import pallas as pl
from jax.experimental.pallas import tpu as pltpu

# scaled-down channel configuration (mirrors original 1024 / 2048 / 512 / 256)
C_DSN_IN = 64        # backbone feature x[-2]  (orig 1024)
C_OC_IN = 128        # backbone feature x[-1]  (orig 2048)
MID = 32             # orig 512
KEY = 16             # orig key_channels = 256
VAL = 16             # orig value_channels = 256
NUM_CLASSES = 8
BACKBONE_STRIDE = 8  # dilated-ResNet style stride-8 features


def _round_up(x, m):
    return (x + m - 1) // m * m


# ---------------------------------------------------------------------------
# Pallas kernel 1: tiled matmul + per-output-channel shift + optional ReLU.
# BN scale is folded into the weight columns at trace time; only the shift add
# remains in-kernel.  bf16 MXU inputs, f32 VMEM accumulator, reduction axis
# last in the grid, init/finalize via pl.when.
# ---------------------------------------------------------------------------
def _mm_kernel(x_ref, w_ref, shift_ref, o_ref, acc_ref, *, relu):
    @pl.when(pl.program_id(2) == 0)
    def _init():
        acc_ref[...] = jnp.zeros_like(acc_ref)

    acc_ref[...] += jnp.dot(x_ref[...], w_ref[...],
                            preferred_element_type=jnp.float32)

    @pl.when(pl.program_id(2) == pl.num_programs(2) - 1)
    def _fin():
        y = acc_ref[...] + shift_ref[...]
        if relu:
            y = jnp.maximum(y, 0.0)
        o_ref[...] = y.astype(o_ref.dtype)


def matmul_shift(x, w, shift, relu=False):
    """(M,K) @ (K,N) + shift[N] (+ReLU).  Pads M/N/K to tile multiples
    (N is padded to >=128 so stores are lane-dense) and slices the result."""
    M, K = x.shape
    K2, N = w.shape
    assert K == K2
    tm = 256 if M >= 256 else _round_up(M, 8)
    tn = 256 if N >= 256 else 128
    tk = 512 if K >= 512 else _round_up(K, 128)
    Mp, Np, Kp = _round_up(M, tm), _round_up(N, tn), _round_up(K, tk)

    xb = jnp.pad(x.astype(jnp.bfloat16), ((0, Mp - M), (0, Kp - K)))
    wb = jnp.pad(w.astype(jnp.bfloat16), ((0, Kp - K), (0, Np - N)))
    sb = jnp.pad(shift.reshape(1, N).astype(jnp.float32), ((0, 0), (0, Np - N)))

    grid = (Mp // tm, Np // tn, Kp // tk)
    out = pl.pallas_call(
        functools.partial(_mm_kernel, relu=relu),
        out_shape=jax.ShapeDtypeStruct((Mp, Np), jnp.float32),
        grid=grid,
        in_specs=[
            pl.BlockSpec((tm, tk), lambda i, j, k: (i, k)),
            pl.BlockSpec((tk, tn), lambda i, j, k: (k, j)),
            pl.BlockSpec((1, tn), lambda i, j, k: (0, j)),
        ],
        out_specs=pl.BlockSpec((tm, tn), lambda i, j, k: (i, j)),
        scratch_shapes=[pltpu.VMEM((tm, tn), jnp.float32)],
        compiler_params=pltpu.CompilerParams(
            dimension_semantics=("parallel", "parallel", "arbitrary")),
        cost_estimate=pl.CostEstimate(
            flops=2 * Mp * Np * Kp, transcendentals=0,
            bytes_accessed=2 * (Mp * Kp + Kp * Np) + 4 * Mp * Np),
    )(xb, wb, sb)
    return out[:M, :N]


# ---------------------------------------------------------------------------
# Pallas kernel 2: fused 3x3 conv (stride 1, pad 1) + folded BN + optional ReLU.
# The padded image is flattened to ((H+2)*(W+2)+2, Cin); each of the 9 taps is
# a contiguous sublane-shifted window, so the conv is 9 accumulated matmuls in
# VMEM -- no im2col tensor ever goes through HBM.  Output channels are padded
# to 128 (lane-dense stores); the junk columns from the row-padding are sliced
# off outside the kernel.
# ---------------------------------------------------------------------------
def _conv3x3_kernel(xpf_ref, w_ref, shift_ref, o_ref, *, relu, H, W, Cin):
    Wp = W + 2
    L = H * Wp
    acc = jnp.zeros((L, o_ref.shape[-1]), jnp.float32)
    for dy in range(3):
        for dx in range(3):
            off = dy * Wp + dx
            t = dy * 3 + dx
            patch = xpf_ref[0, off:off + L, :]            # (L, Cin) bf16
            wt = w_ref[t * Cin:(t + 1) * Cin, :]          # (Cin, Cop) bf16
            acc = acc + jnp.dot(patch, wt, preferred_element_type=jnp.float32)
    y = acc + shift_ref[...]
    if relu:
        y = jnp.maximum(y, 0.0)
    o_ref[0] = y.astype(o_ref.dtype)


def conv3x3(x, w, scale, shift, relu=False):
    """x: (B,H,W,Cin) f32; w: (3,3,Cin,Cout).  Returns (B,H,W,Cop) with
    Cop = round_up(Cout,128); channels >= Cout are exactly zero."""
    B, H, W, Cin = x.shape
    Cout = w.shape[-1]
    Cop = max(128, _round_up(Cout, 128))
    Wp = W + 2
    L_in = (H + 2) * Wp + 2
    L_out = H * Wp

    w_eff = (w * scale.reshape(1, 1, 1, Cout)).reshape(9 * Cin, Cout)
    w_eff = jnp.pad(w_eff, ((0, 0), (0, Cop - Cout))).astype(jnp.bfloat16)
    sh = jnp.pad(shift.reshape(1, Cout).astype(jnp.float32),
                 ((0, 0), (0, Cop - Cout)))

    xp = jnp.pad(x, ((0, 0), (1, 1), (1, 1), (0, 0)))
    xpf = xp.reshape(B, (H + 2) * Wp, Cin)
    xpf = jnp.pad(xpf, ((0, 0), (0, 2), (0, 0))).astype(jnp.bfloat16)

    out = pl.pallas_call(
        functools.partial(_conv3x3_kernel, relu=relu, H=H, W=W, Cin=Cin),
        out_shape=jax.ShapeDtypeStruct((B, L_out, Cop), jnp.float32),
        grid=(B,),
        in_specs=[
            pl.BlockSpec((1, L_in, Cin), lambda b: (b, 0, 0)),
            pl.BlockSpec((9 * Cin, Cop), lambda b: (0, 0)),
            pl.BlockSpec((1, Cop), lambda b: (0, 0)),
        ],
        out_specs=pl.BlockSpec((1, L_out, Cop), lambda b: (b, 0, 0)),
        compiler_params=pltpu.CompilerParams(dimension_semantics=("parallel",)),
    )(xpf, w_eff, sh)
    return out.reshape(B, H, Wp, Cop)[:, :, :W, :]


# ---------------------------------------------------------------------------
# Pallas kernel 3: fused BaseOC tail, one grid step per batch element.
#   proj = feats @ [w_key | w_val] + shift   ;  qk = relu(proj[:, :KEY])
#   ctx  = softmax(scale * qk qk^T) @ val    (Q is reused as K)
#   ctxW = ctx @ W_w + W_b
#   oc   = relu(ctxW @ ocbn_ctx + feats @ ocbn_feat + shift_oc)   (fused concat)
# Everything stays resident in VMEM; only padded-128-channel `oc` is written.
# TODO(synk): at real stride-8 resolutions (N ~ 4096) the full NxN softmax must
# become a flash-style online-softmax loop tiled over KV blocks.
# ---------------------------------------------------------------------------
def _oc_tail_kernel(feats_ref, wqv_ref, sqv_ref, wW_ref, bW_ref,
                    woc_ctx_ref, woc_feat_ref, soc_ref, o_ref,
                    *, key_ch, scale):
    f = feats_ref[0]                                             # (N, Cf) bf16
    proj = jnp.dot(f, wqv_ref[...],
                   preferred_element_type=jnp.float32) + sqv_ref[...]
    qk = jnp.maximum(proj[:, :key_ch], 0.0)                      # f_key: BN+ReLU
    val = proj[:, key_ch:]                                       # f_value: no ReLU

    qkb = qk.astype(jnp.bfloat16)
    sim = jax.lax.dot_general(qkb, qkb, (((1,), (1,)), ((), ())),
                              preferred_element_type=jnp.float32) * scale
    sim = sim - jnp.max(sim, axis=-1, keepdims=True)
    p = jnp.exp(sim)
    p = p * pl.reciprocal(jnp.sum(p, axis=-1, keepdims=True), approx=True)

    ctx = jnp.dot(p.astype(jnp.bfloat16), val.astype(jnp.bfloat16),
                  preferred_element_type=jnp.float32)            # (N, VAL)
    ctxW = jnp.dot(ctx.astype(jnp.bfloat16), wW_ref[...],
                   preferred_element_type=jnp.float32) + bW_ref[...]

    oc = (jnp.dot(ctxW.astype(jnp.bfloat16), woc_ctx_ref[...],
                  preferred_element_type=jnp.float32)
          + jnp.dot(f, woc_feat_ref[...], preferred_element_type=jnp.float32)
          + soc_ref[...])
    oc = jnp.maximum(oc, 0.0)
    o_ref[0] = oc.astype(o_ref.dtype)


def baseoc_tail(feats_pad, p):
    """feats_pad: (B,H,W,Cf) with Cf>=MID (channels >=MID are zero).
    Returns (B,H,W,128); channels >= MID are exactly zero."""
    B, H, W, Cf = feats_pad.shape
    Npix = H * W
    Cop = max(128, _round_up(MID, 128))

    sc_qk, sh_qk = fold_bn(p['fkey_bn'], p['fkey_b'])
    wqv = jnp.concatenate([p['fkey_w'] * sc_qk.reshape(1, KEY), p['fval_w']], axis=1)
    wqv = jnp.pad(wqv, ((0, Cf - MID), (0, 0))).astype(jnp.bfloat16)
    sqv = jnp.concatenate([sh_qk, p['fval_b']]).reshape(1, KEY + VAL).astype(jnp.float32)

    wW = p['W_w'].astype(jnp.bfloat16)
    bW = p['W_b'].reshape(1, MID).astype(jnp.float32)

    sc_oc, sh_oc = fold_bn(p['ocbn_bn'], p['ocbn_b'])
    w_oc = p['ocbn_w'] * sc_oc.reshape(1, MID)                  # (2*MID, MID)
    w_oc_ctx = jnp.pad(w_oc[:MID], ((0, 0), (0, Cop - MID))).astype(jnp.bfloat16)
    w_oc_feat = jnp.pad(w_oc[MID:], ((0, Cf - MID), (0, Cop - MID))).astype(jnp.bfloat16)
    s_oc = jnp.pad(sh_oc.reshape(1, MID).astype(jnp.float32), ((0, 0), (0, Cop - MID)))

    feats3 = feats_pad.reshape(B, Npix, Cf).astype(jnp.bfloat16)
    out = pl.pallas_call(
        functools.partial(_oc_tail_kernel, key_ch=KEY, scale=KEY ** -0.5),
        out_shape=jax.ShapeDtypeStruct((B, Npix, Cop), jnp.float32),
        grid=(B,),
        in_specs=[
            pl.BlockSpec((1, Npix, Cf), lambda b: (b, 0, 0)),
            pl.BlockSpec((Cf, KEY + VAL), lambda b: (0, 0)),
            pl.BlockSpec((1, KEY + VAL), lambda b: (0, 0)),
            pl.BlockSpec((VAL, MID), lambda b: (0, 0)),
            pl.BlockSpec((1, MID), lambda b: (0, 0)),
            pl.BlockSpec((MID, Cop), lambda b: (0, 0)),
            pl.BlockSpec((Cf, Cop), lambda b: (0, 0)),
            pl.BlockSpec((1, Cop), lambda b: (0, 0)),
        ],
        out_specs=pl.BlockSpec((1, Npix, Cop), lambda b: (b, 0, 0)),
        compiler_params=pltpu.CompilerParams(dimension_semantics=("parallel",)),
    )(feats3, wqv, sqv, wW, bW, w_oc_ctx, w_oc_feat, s_oc)
    return out.reshape(B, H, W, Cop)


# ---------------------------------------------------------------------------
# glue (BN folding, 1x1 conv, matmul-form bilinear resize)
# ---------------------------------------------------------------------------
def fold_bn(bn, conv_bias, eps=1e-5):
    gamma, beta, mean, var = bn                    # eval-mode BN (running stats)
    scale = gamma / jnp.sqrt(var + eps)
    shift = beta - mean * scale + conv_bias * scale
    return scale, shift


def conv1x1(x, w, scale, shift, relu=False):
    B, H, W, C = x.shape
    Kw, Cout = w.shape
    w_eff = w * scale.reshape(1, Cout)
    if C > Kw:                                     # input carries zero-padded channels
        w_eff = jnp.pad(w_eff, ((0, C - Kw), (0, 0)))
    out = matmul_shift(x.reshape(B * H * W, C), w_eff, shift, relu=relu)
    return out.reshape(B, H, W, Cout)


def _interp_matrix(in_size, out_size):
    # align_corners=True sampling positions
    pos = jnp.linspace(0.0, in_size - 1.0, out_size)
    i0 = jnp.floor(pos).astype(jnp.int32)
    i1 = jnp.minimum(i0 + 1, in_size - 1)
    w = (pos - i0.astype(jnp.float32))[:, None]
    return (jax.nn.one_hot(i0, in_size, dtype=jnp.float32) * (1.0 - w)
            + jax.nn.one_hot(i1, in_size, dtype=jnp.float32) * w)


def bilinear_align_corners(x, out_h, out_w):
    # matmul formulation of F.interpolate(mode='bilinear', align_corners=True)
    B, H, W, C = x.shape
    Ay = _interp_matrix(H, out_h)          # (out_h, H)
    Ax = _interp_matrix(W, out_w)          # (out_w, W)
    t = jnp.einsum('oh,bhwc->bowc', Ay, x)
    return jnp.einsum('qw,bowc->boqc', Ax, t)


# ---------------------------------------------------------------------------
# parameters (deterministic synthetic init)
# ---------------------------------------------------------------------------
def init_params(key):
    keys = iter(jax.random.split(key, 48))

    def nrm(shape, s=0.05):
        return s * jax.random.normal(next(keys), shape, jnp.float32)

    def bn(c):
        return (1.0 + 0.1 * jax.random.normal(next(keys), (c,), jnp.float32),
                0.1 * jax.random.normal(next(keys), (c,), jnp.float32),
                0.1 * jax.random.normal(next(keys), (c,), jnp.float32),
                jax.random.uniform(next(keys), (c,), jnp.float32, 0.5, 1.5))

    s2 = BACKBONE_STRIDE * BACKBONE_STRIDE * 3
    p = {}
    # stub backbone projections
    p['bb_w_m2'] = nrm((s2, C_DSN_IN));  p['bb_b_m2'] = nrm((C_DSN_IN,))
    p['bb_w_m1'] = nrm((s2, C_OC_IN));   p['bb_b_m1'] = nrm((C_OC_IN,))
    # dsn: Conv3x3 -> BN -> ReLU -> Conv1x1
    p['dsn_conv_w'] = nrm((3, 3, C_DSN_IN, MID)); p['dsn_conv_b'] = nrm((MID,)); p['dsn_bn'] = bn(MID)
    p['dsn_cls_w'] = nrm((MID, NUM_CLASSES));     p['dsn_cls_b'] = nrm((NUM_CLASSES,))
    # oc_module_pre: Conv3x3 -> BN -> ReLU
    p['pre_conv_w'] = nrm((3, 3, C_OC_IN, MID));  p['pre_conv_b'] = nrm((MID,)); p['pre_bn'] = bn(MID)
    # BaseOC_Module / SelfAttentionBlock2D
    p['fkey_w'] = nrm((MID, KEY)); p['fkey_b'] = nrm((KEY,)); p['fkey_bn'] = bn(KEY)
    p['fval_w'] = nrm((MID, VAL)); p['fval_b'] = nrm((VAL,))
    # NOTE: reference zero-inits W; random here so the attention path is exercised.
    p['W_w'] = nrm((VAL, MID));    p['W_b'] = nrm((MID,))
    p['ocbn_w'] = nrm((2 * MID, MID)); p['ocbn_b'] = nrm((MID,)); p['ocbn_bn'] = bn(MID)
    # cls head
    p['cls_w'] = nrm((MID, NUM_CLASSES)); p['cls_b'] = nrm((NUM_CLASSES,))
    return p


# ---------------------------------------------------------------------------
# BaseOCNet forward
# ---------------------------------------------------------------------------
def base_ocnet_forward(params, x_nchw):
    x = jnp.transpose(x_nchw, (0, 2, 3, 1)).astype(jnp.float32)   # NHWC
    B, Hin, Win, Cin = x.shape
    s = BACKBONE_STRIDE
    Hf, Wf = Hin // s, Win // s

    # TODO(synk): real ResNet/HRNet backbone (BackboneSelector) is not in the
    # provided module; stubbed with a deterministic space-to-depth + one fused
    # Pallas 1x1 projection that produces both stride-8 feature maps
    # x[-2] (C_DSN_IN ch) and x[-1] (C_OC_IN ch) in a single matmul.
    feat = x.reshape(B, Hf, s, Wf, s, Cin).transpose(0, 1, 3, 2, 4, 5)
    feat = feat.reshape(B * Hf * Wf, s * s * Cin)
    w_bb = jnp.concatenate([params['bb_w_m2'], params['bb_w_m1']], axis=1)
    b_bb = jnp.concatenate([params['bb_b_m2'], params['bb_b_m1']])
    bb = matmul_shift(feat, w_bb, b_bb, relu=True)
    feat_m2 = bb[:, :C_DSN_IN].reshape(B, Hf, Wf, C_DSN_IN)
    feat_m1 = bb[:, C_DSN_IN:].reshape(B, Hf, Wf, C_OC_IN)

    # ---- dsn head: Conv3x3 -> BN -> ReLU -> Conv1x1(+bias) ----
    sc, sh = fold_bn(params['dsn_bn'], params['dsn_conv_b'])
    h = conv3x3(feat_m2, params['dsn_conv_w'], sc, sh, relu=True)     # (B,Hf,Wf,128)
    x_dsn = conv1x1(h, params['dsn_cls_w'], jnp.ones((NUM_CLASSES,), jnp.float32),
                    params['dsn_cls_b'])

    # ---- oc_module_pre: Conv3x3 -> BN -> ReLU ----
    sc, sh = fold_bn(params['pre_bn'], params['pre_conv_b'])
    feats_pad = conv3x3(feat_m1, params['pre_conv_w'], sc, sh, relu=True)  # (B,Hf,Wf,128)

    # ---- BaseOC_Module: fused tail kernel (proj -> attention -> W -> concat+1x1) ----
    oc_pad = baseoc_tail(feats_pad, params)                           # (B,Hf,Wf,128)
    # Dropout2d(0.05): identity in inference mode.

    # ---- cls head ----
    logits = conv1x1(oc_pad, params['cls_w'], jnp.ones((NUM_CLASSES,), jnp.float32),
                     params['cls_b'])

    # ---- bilinear upsample (align_corners=True) to input resolution ----
    x_dsn_up = bilinear_align_corners(x_dsn, Hin, Win)
    x_up = bilinear_align_corners(logits, Hin, Win)

    return (jnp.transpose(x_dsn_up, (0, 3, 1, 2)),
            jnp.transpose(x_up, (0, 3, 1, 2)))


if __name__ == "__main__":
    key = jax.random.PRNGKey(0)
    pkey, xkey = jax.random.split(key)
    params = init_params(pkey)
    x_ = jax.random.normal(xkey, (2, 3, 32, 32), jnp.float32)   # NCHW like PyTorch

    fwd = jax.jit(base_ocnet_forward)
    x_dsn, x_out = fwd(params, x_)
    jax.block_until_ready((x_dsn, x_out))

    assert x_dsn.shape == (2, NUM_CLASSES, 32, 32), x_dsn.shape
    assert x_out.shape == (2, NUM_CLASSES, 32, 32), x_out.shape
    assert jnp.all(jnp.isfinite(x_dsn)) and jnp.all(jnp.isfinite(x_out))
    print("KERNEL_OK")
</pallas_src>

<mosaic_0001>
module attributes {stable_mosaic.version = 11 : i64} {
  func.func @_mm_kernel(%arg0: i32, %arg1: i32, %arg2: i32, %arg3: memref<32x256xbf16, #tpu.memory_space<vmem>>, %arg4: memref<256x128xbf16, #tpu.memory_space<vmem>>, %arg5: memref<1x128xf32, #tpu.memory_space<vmem>>, %arg6: memref<32x128xf32, #tpu.memory_space<vmem>>, %arg7: memref<32x128xf32, #tpu.memory_space<vmem>>) attributes {dimension_semantics = [#tpu.dimension_semantics<parallel>, #tpu.dimension_semantics<parallel>, #tpu.dimension_semantics<arbitrary>], iteration_bounds = array<i64: 1, 2, 1>, scalar_prefetch = 0 : i64, scratch_operands = 1 : i64, tpu.core_type = #tpu.core_type<tc>, window_params = [{transform_indices = @transform_0, window_bounds = array<i64: 32, 256>}, {transform_indices = @transform_1, window_bounds = array<i64: 256, 128>}, {transform_indices = @transform_2, window_bounds = array<i64: 1, 128>}, {transform_indices = @transform_3, window_bounds = array<i64: 32, 128>}]} {
    %c0_i32 = arith.constant 0 : i32
    %0 = arith.cmpi eq, %arg2, %c0_i32 : i32
    %1 = arith.extui %0 : i1 to i32
    %c0_i32_0 = arith.constant 0 : i32
    %2 = arith.cmpi ne, %1, %c0_i32_0 : i32
    scf.if %2 {
      %cst_10 = arith.constant 0.000000e+00 : f32
      %12 = vector.broadcast %cst_10 : f32 to vector<32x128xf32>
      %c0_11 = arith.constant 0 : index
      %c0_12 = arith.constant 0 : index
      %13 = vector.load %arg7[%c0_11, %c0_12] : memref<32x128xf32, #tpu.memory_space<vmem>>, vector<32x128xf32>
      tpu.vector_store %arg7[%c0_11, %c0_12], %12 {strides = array<i32>} : memref<32x128xf32, #tpu.memory_space<vmem>>, vector<32x128xf32>,
    } else {
    }
    %c0 = arith.constant 0 : index
    %c0_1 = arith.constant 0 : index
    %3 = vector.load %arg7[%c0, %c0_1] : memref<32x128xf32, #tpu.memory_space<vmem>>, vector<32x128xf32>
    %c0_2 = arith.constant 0 : index
    %c0_3 = arith.constant 0 : index
    %4 = vector.load %arg3[%c0_2, %c0_3] : memref<32x256xbf16, #tpu.memory_space<vmem>>, vector<32x256xbf16>
    %c0_4 = arith.constant 0 : index
    %c0_5 = arith.constant 0 : index
    %5 = vector.load %arg4[%c0_4, %c0_5] : memref<256x128xbf16, #tpu.memory_space<vmem>>, vector<256x128xbf16>
    %cst = arith.constant dense<0.000000e+00> : vector<32x128xf32>
    %6 = tpu.matmul %4, %5, %cst {dimension_numbers = #tpu.dot_dimension_numbers<[1], [0], [0], [1], [0, 0, 1, 1], [], []>} : vector<32x256xbf16>, vector<256x128xbf16>, vector<32x128xf32> -> vector<32x128xf32>
    %7 = arith.addf %3, %6 : vector<32x128xf32>
    %c0_6 = arith.constant 0 : index
    %c0_7 = arith.constant 0 : index
    %8 = vector.load %arg7[%c0_6, %c0_7] : memref<32x128xf32, #tpu.memory_space<vmem>>, vector<32x128xf32>
    tpu.vector_store %arg7[%c0_6, %c0_7], %7 {strides = array<i32>} : memref<32x128xf32, #tpu.memory_space<vmem>>, vector<32x128xf32>,
    %c0_i32_8 = arith.constant 0 : i32
    %9 = arith.cmpi eq, %arg2, %c0_i32_8 : i32
    %10 = arith.extui %9 : i1 to i32
    %c0_i32_9 = arith.constant 0 : i32
    %11 = arith.cmpi ne, %10, %c0_i32_9 : i32
    scf.if %11 {
      %c0_10 = arith.constant 0 : index
      %c0_11 = arith.constant 0 : index
      %12 = vector.load %arg7[%c0_10, %c0_11] : memref<32x128xf32, #tpu.memory_space<vmem>>, vector<32x128xf32>
      %c0_12 = arith.constant 0 : index
      %c0_13 = arith.constant 0 : index
      %13 = vector.load %arg5[%c0_12, %c0_13] : memref<1x128xf32, #tpu.memory_space<vmem>>, vector<1x128xf32>
      %14 = vector.broadcast %13 : vector<1x128xf32> to vector<32x128xf32>
      %15 = arith.addf %12, %14 : vector<32x128xf32>
      %cst_14 = arith.constant 0.000000e+00 : f32
      %16 = vector.broadcast %cst_14 : f32 to vector<32x128xf32>
      %17 = arith.maximumf %15, %16 : vector<32x128xf32>
      %c0_15 = arith.constant 0 : index
      %c0_16 = arith.constant 0 : index
      %18 = vector.load %arg6[%c0_15, %c0_16] : memref<32x128xf32, #tpu.memory_space<vmem>>, vector<32x128xf32>
      tpu.vector_store %arg6[%c0_15, %c0_16], %17 {strides = array<i32>} : memref<32x128xf32, #tpu.memory_space<vmem>>, vector<32x128xf32>,
    } else {
    }
    return
  }
  func.func @transform_0(%arg0: i32, %arg1: i32, %arg2: i32) -> (i32, i32) {
    %c0_i32 = arith.constant 0 : i32
    return %arg0, %arg2 : i32, i32
  }
  func.func @transform_1(%arg0: i32, %arg1: i32, %arg2: i32) -> (i32, i32) {
    %c0_i32 = arith.constant 0 : i32
    return %arg2, %arg1 : i32, i32
  }
  func.func @transform_2(%arg0: i32, %arg1: i32, %arg2: i32) -> (i32, i32) {
    %c0_i32 = arith.constant 0 : i32
    %c0_i32_0 = arith.constant 0 : i32
    return %c0_i32, %arg1 : i32, i32
  }
  func.func @transform_3(%arg0: i32, %arg1: i32, %arg2: i32) -> (i32, i32) {
    %c0_i32 = arith.constant 0 : i32
    return %arg0, %arg1 : i32, i32
  }
}

module attributes {stable_mosaic.version = 11 : i64} {
  func.func @_conv3x3_kernel(%arg0: i32, %arg1: memref<1x38x128xbf16, #tpu.memory_space<vmem>>, %arg2: memref<1152x128xbf16, #tpu.memory_space<vmem>>, %arg3: memref<1x128xf32, #tpu.memory_space<vmem>>, %arg4: memref<1x24x128xf32, #tpu.memory_space<vmem>>) attributes {dimension_semantics = [#tpu.dimension_semantics<parallel>], iteration_bounds = array<i64: 2>, scalar_prefetch = 0 : i64, scratch_operands = 0 : i64, tpu.core_type = #tpu.core_type<tc>, window_params = [{transform_indices = @transform_0, window_bounds = array<i64: 1, 38, 128>}, {pipeline_mode = #tpu.pipeline_mode<synchronous>, transform_indices = @transform_1, window_bounds = array<i64: 1152, 128>}, {pipeline_mode = #tpu.pipeline_mode<synchronous>, transform_indices = @transform_2, window_bounds = array<i64: 1, 128>}, {transform_indices = @transform_3, window_bounds = array<i64: 1, 24, 128>}]} {
    %cst = arith.constant 0.000000e+00 : f32
    %0 = vector.broadcast %cst : f32 to vector<24x128xf32>
    %c0 = arith.constant 0 : index
    %c0_0 = arith.constant 0 : index
    %c0_1 = arith.constant 0 : index
    %1 = vector.load %arg1[%c0, %c0_0, %c0_1] : memref<1x38x128xbf16, #tpu.memory_space<vmem>>, vector<1x24x128xbf16>
    %2 = vector.shape_cast %1 : vector<1x24x128xbf16> to vector<24x128xbf16>
    %c0_2 = arith.constant 0 : index
    %c0_3 = arith.constant 0 : index
    %3 = vector.load %arg2[%c0_2, %c0_3] : memref<1152x128xbf16, #tpu.memory_space<vmem>>, vector<128x128xbf16>
    %cst_4 = arith.constant dense<0.000000e+00> : vector<24x128xf32>
    %4 = tpu.matmul %2, %3, %cst_4 {dimension_numbers = #tpu.dot_dimension_numbers<[1], [0], [0], [1], [0, 0, 1, 1], [], []>} : vector<24x128xbf16>, vector<128x128xbf16>, vector<24x128xf32> -> vector<24x128xf32>
    %5 = arith.addf %0, %4 : vector<24x128xf32>
    %c0_5 = arith.constant 0 : index
    %c1 = arith.constant 1 : index
    %c0_6 = arith.constant 0 : index
    %6 = vector.load %arg1[%c0_5, %c1, %c0_6] : memref<1x38x128xbf16, #tpu.memory_space<vmem>>, vector<1x24x128xbf16>
    %7 = vector.shape_cast %6 : vector<1x24x128xbf16> to vector<24x128xbf16>
    %c128 = arith.constant 128 : index
    %c0_7 = arith.constant 0 : index
    %8 = vector.load %arg2[%c128, %c0_7] : memref<1152x128xbf16, #tpu.memory_space<vmem>>, vector<128x128xbf16>
    %cst_8 = arith.constant dense<0.000000e+00> : vector<24x128xf32>
    %9 = tpu.matmul %7, %8, %cst_8 {dimension_numbers = #tpu.dot_dimension_numbers<[1], [0], [0], [1], [0, 0, 1, 1], [], []>} : vector<24x128xbf16>, vector<128x128xbf16>, vector<24x128xf32> -> vector<24x128xf32>
    %10 = arith.addf %5, %9 : vector<24x128xf32>
    %c0_9 = arith.constant 0 : index
    %c2 = arith.constant 2 : index
    %c0_10 = arith.constant 0 : index
    %11 = vector.load %arg1[%c0_9, %c2, %c0_10] : memref<1x38x128xbf16, #tpu.memory_space<vmem>>, vector<1x24x128xbf16>
    %12 = vector.shape_cast %11 : vector<1x24x128xbf16> to vector<24x128xbf16>
    %c256 = arith.constant 256 : index
    %c0_11 = arith.constant 0 : index
    %13 = vector.load %arg2[%c256, %c0_11] : memref<1152x128xbf16, #tpu.memory_space<vmem>>, vector<128x128xbf16>
    %cst_12 = arith.constant dense<0.000000e+00> : vector<24x128xf32>
    %14 = tpu.matmul %12, %13, %cst_12 {dimension_numbers = #tpu.dot_dimension_numbers<[1], [0], [0], [1], [0, 0, 1, 1], [], []>} : vector<24x128xbf16>, vector<128x128xbf16>, vector<24x128xf32> -> vector<24x128xf32>
    %15 = arith.addf %10, %14 : vector<24x128xf32>
    %c0_13 = arith.constant 0 : index
    %c6 = arith.constant 6 : index
    %c0_14 = arith.constant 0 : index
    %16 = vector.load %arg1[%c0_13, %c6, %c0_14] : memref<1x38x128xbf16, #tpu.memory_space<vmem>>, vector<1x24x128xbf16>
    %17 = vector.shape_cast %16 : vector<1x24x128xbf16> to vector<24x128xbf16>
    %c384 = arith.constant 384 : index
    %c0_15 = arith.constant 0 : index
    %18 = vector.load %arg2[%c384, %c0_15] : memref<1152x128xbf16, #tpu.memory_space<vmem>>, vector<128x128xbf16>
    %cst_16 = arith.constant dense<0.000000e+00> : vector<24x128xf32>
    %19 = tpu.matmul %17, %18, %cst_16 {dimension_numbers = #tpu.dot_dimension_numbers<[1], [0], [0], [1], [0, 0, 1, 1], [], []>} : vector<24x128xbf16>, vector<128x128xbf16>, vector<24x128xf32> -> vector<24x128xf32>
    %20 = arith.addf %15, %19 : vector<24x128xf32>
    %c0_17 = arith.constant 0 : index
    %c7 = arith.constant 7 : index
    %c0_18 = arith.constant 0 : index
    %21 = vector.load %arg1[%c0_17, %c7, %c0_18] : memref<1x38x128xbf16, #tpu.memory_space<vmem>>, vector<1x24x128xbf16>
    %22 = vector.shape_cast %21 : vector<1x24x128xbf16> to vector<24x128xbf16>
    %c512 = arith.constant 512 : index
    %c0_19 = arith.constant 0 : index
    %23 = vector.load %arg2[%c512, %c0_19] : memref<1152x128xbf16, #tpu.memory_space<vmem>>, vector<128x128xbf16>
    %cst_20 = arith.constant dense<0.000000e+00> : vector<24x128xf32>
    %24 = tpu.matmul %22, %23, %cst_20 {dimension_numbers = #tpu.dot_dimension_numbers<[1], [0], [0], [1], [0, 0, 1, 1], [], []>} : vector<24x128xbf16>, vector<128x128xbf16>, vector<24x128xf32> -> vector<24x128xf32>
    %25 = arith.addf %20, %24 : vector<24x128xf32>
    %c0_21 = arith.constant 0 : index
    %c8 = arith.constant 8 : index
    %c0_22 = arith.constant 0 : index
    %26 = vector.load %arg1[%c0_21, %c8, %c0_22] : memref<1x38x128xbf16, #tpu.memory_space<vmem>>, vector<1x24x128xbf16>
    %27 = vector.shape_cast %26 : vector<1x24x128xbf16> to vector<24x128xbf16>
    %c640 = arith.constant 640 : index
    %c0_23 = arith.constant 0 : index
    %28 = vector.load %arg2[%c640, %c0_23] : memref<1152x128xbf16, #tpu.memory_space<vmem>>, vector<128x128xbf16>
    %cst_24 = arith.constant dense<0.000000e+00> : vector<24x128xf32>
    %29 = tpu.matmul %27, %28, %cst_24 {dimension_numbers = #tpu.dot_dimension_numbers<[1], [0], [0], [1], [0, 0, 1, 1], [], []>} : vector<24x128xbf16>, vector<128x128xbf16>, vector<24x128xf32> -> vector<24x128xf32>
    %30 = arith.addf %25, %29 : vector<24x128xf32>
    %c0_25 = arith.constant 0 : index
    %c12 = arith.constant 12 : index
    %c0_26 = arith.constant 0 : index
    %31 = vector.load %arg1[%c0_25, %c12, %c0_26] : memref<1x38x128xbf16, #tpu.memory_space<vmem>>, vector<1x24x128xbf16>
    %32 = vector.shape_cast %31 : vector<1x24x128xbf16> to vector<24x128xbf16>
    %c768 = arith.constant 768 : index
    %c0_27 = arith.constant 0 : index
    %33 = vector.load %arg2[%c768, %c0_27] : memref<1152x128xbf16, #tpu.memory_space<vmem>>, vector<128x128xbf16>
    %cst_28 = arith.constant dense<0.000000e+00> : vector<24x128xf32>
    %34 = tpu.matmul %32, %33, %cst_28 {dimension_numbers = #tpu.dot_dimension_numbers<[1], [0], [0], [1], [0, 0, 1, 1], [], []>} : vector<24x128xbf16>, vector<128x128xbf16>, vector<24x128xf32> -> vector<24x128xf32>
    %35 = arith.addf %30, %34 : vector<24x128xf32>
    %c0_29 = arith.constant 0 : index
    %c13 = arith.constant 13 : index
    %c0_30 = arith.constant 0 : index
    %36 = vector.load %arg1[%c0_29, %c13, %c0_30] : memref<1x38x128xbf16, #tpu.memory_space<vmem>>, vector<1x24x128xbf16>
    %37 = vector.shape_cast %36 : vector<1x24x128xbf16> to vector<24x128xbf16>
    %c896 = arith.constant 896 : index
    %c0_31 = arith.constant 0 : index
    %38 = vector.load %arg2[%c896, %c0_31] : memref<1152x128xbf16, #tpu.memory_space<vmem>>, vector<128x128xbf16>
    %cst_32 = arith.constant dense<0.000000e+00> : vector<24x128xf32>
    %39 = tpu.matmul %37, %38, %cst_32 {dimension_numbers = #tpu.dot_dimension_numbers<[1], [0], [0], [1], [0, 0, 1, 1], [], []>} : vector<24x128xbf16>, vector<128x128xbf16>, vector<24x128xf32> -> vector<24x128xf32>
    %40 = arith.addf %35, %39 : vector<24x128xf32>
    %c0_33 = arith.constant 0 : index
    %c14 = arith.constant 14 : index
    %c0_34 = arith.constant 0 : index
    %41 = vector.load %arg1[%c0_33, %c14, %c0_34] : memref<1x38x128xbf16, #tpu.memory_space<vmem>>, vector<1x24x128xbf16>
    %42 = vector.shape_cast %41 : vector<1x24x128xbf16> to vector<24x128xbf16>
    %c1024 = arith.constant 1024 : index
    %c0_35 = arith.constant 0 : index
    %43 = vector.load %arg2[%c1024, %c0_35] : memref<1152x128xbf16, #tpu.memory_space<vmem>>, vector<128x128xbf16>
    %cst_36 = arith.constant dense<0.000000e+00> : vector<24x128xf32>
    %44 = tpu.matmul %42, %43, %cst_36 {dimension_numbers = #tpu.dot_dimension_numbers<[1], [0], [0], [1], [0, 0, 1, 1], [], []>} : vector<24x128xbf16>, vector<128x128xbf16>, vector<24x128xf32> -> vector<24x128xf32>
    %45 = arith.addf %40, %44 : vector<24x128xf32>
    %c0_37 = arith.constant 0 : index
    %c0_38 = arith.constant 0 : index
    %46 = vector.load %arg3[%c0_37, %c0_38] : memref<1x128xf32, #tpu.memory_space<vmem>>, vector<1x128xf32>
    %47 = vector.broadcast %46 : vector<1x128xf32> to vector<24x128xf32>
    %48 = arith.addf %45, %47 : vector<24x128xf32>
    %cst_39 = arith.constant 0.000000e+00 : f32
    %49 = vector.broadcast %cst_39 : f32 to vector<24x128xf32>
    %50 = arith.maximumf %48, %49 : vector<24x128xf32>
    %c0_40 = arith.constant 0 : index
    %c0_41 = arith.constant 0 : index
    %c0_42 = arith.constant 0 : index
    %51 = vector.load %arg4[%c0_40, %c0_41, %c0_42] : memref<1x24x128xf32, #tpu.memory_space<vmem>>, vector<1x24x128xf32>
    %52 = vector.shape_cast %51 : vector<1x24x128xf32> to vector<24x128xf32>
    %53 = vector.shape_cast %50 : vector<24x128xf32> to vector<1x24x128xf32>
    tpu.vector_store %arg4[%c0_40, %c0_41, %c0_42], %53 {strides = array<i32>} : memref<1x24x128xf32, #tpu.memory_space<vmem>>, vector<1x24x128xf32>,
    return
  }
  func.func @transform_0(%arg0: i32) -> (i32, i32, i32) {
    %c0_i32 = arith.constant 0 : i32
    %c0_i32_0 = arith.constant 0 : i32
    %c0_i32_1 = arith.constant 0 : i32
    return %arg0, %c0_i32, %c0_i32_0 : i32, i32, i32
  }
  func.func @transform_1(%arg0: i32) -> (i32, i32) {
    %c0_i32 = arith.constant 0 : i32
    %c0_i32_0 = arith.constant 0 : i32
    %c0_i32_1 = arith.constant 0 : i32
    return %c0_i32, %c0_i32_0 : i32, i32
  }
  func.func @transform_2(%arg0: i32) -> (i32, i32) {
    %c0_i32 = arith.constant 0 : i32
    %c0_i32_0 = arith.constant 0 : i32
    %c0_i32_1 = arith.constant 0 : i32
    return %c0_i32, %c0_i32_0 : i32, i32
  }
  func.func @transform_3(%arg0: i32) -> (i32, i32, i32) {
    %c0_i32 = arith.constant 0 : i32
    %c0_i32_0 = arith.constant 0 : i32
    %c0_i32_1 = arith.constant 0 : i32
    return %arg0, %c0_i32, %c0_i32_0 : i32, i32, i32
  }
}

module attributes {stable_mosaic.version = 11 : i64} {
  func.func @_oc_tail_kernel(%arg0: i32, %arg1: memref<1x16x128xbf16, #tpu.memory_space<vmem>>, %arg2: memref<128x32xbf16, #tpu.memory_space<vmem>>, %arg3: memref<1x32xf32, #tpu.memory_space<vmem>>, %arg4: memref<16x32xbf16, #tpu.memory_space<vmem>>, %arg5: memref<1x32xf32, #tpu.memory_space<vmem>>, %arg6: memref<32x128xbf16, #tpu.memory_space<vmem>>, %arg7: memref<128x128xbf16, #tpu.memory_space<vmem>>, %arg8: memref<1x128xf32, #tpu.memory_space<vmem>>, %arg9: memref<1x16x128xf32, #tpu.memory_space<vmem>>) attributes {dimension_semantics = [#tpu.dimension_semantics<parallel>], iteration_bounds = array<i64: 2>, scalar_prefetch = 0 : i64, scratch_operands = 0 : i64, tpu.core_type = #tpu.core_type<tc>, window_params = [{transform_indices = @transform_0, window_bounds = array<i64: 1, 16, 128>}, {pipeline_mode = #tpu.pipeline_mode<synchronous>, transform_indices = @transform_1, window_bounds = array<i64: 128, 32>}, {pipeline_mode = #tpu.pipeline_mode<synchronous>, transform_indices = @transform_2, window_bounds = array<i64: 1, 32>}, {pipeline_mode = #tpu.pipeline_mode<synchronous>, transform_indices = @transform_3, window_bounds = array<i64: 16, 32>}, {pipeline_mode = #tpu.pipeline_mode<synchronous>, transform_indices = @transform_4, window_bounds = array<i64: 1, 32>}, {pipeline_mode = #tpu.pipeline_mode<synchronous>, transform_indices = @transform_5, window_bounds = array<i64: 32, 128>}, {pipeline_mode = #tpu.pipeline_mode<synchronous>, transform_indices = @transform_6, window_bounds = array<i64: 128, 128>}, {pipeline_mode = #tpu.pipeline_mode<synchronous>, transform_indices = @transform_7, window_bounds = array<i64: 1, 128>}, {transform_indices = @transform_8, window_bounds = array<i64: 1, 16, 128>}]} {
    %c0 = arith.constant 0 : index
    %c0_0 = arith.constant 0 : index
    %c0_1 = arith.constant 0 : index
    %0 = vector.load %arg1[%c0, %c0_0, %c0_1] : memref<1x16x128xbf16, #tpu.memory_space<vmem>>, vector<1x16x128xbf16>
    %1 = vector.shape_cast %0 : vector<1x16x128xbf16> to vector<16x128xbf16>
    %c0_2 = arith.constant 0 : index
    %c0_3 = arith.constant 0 : index
    %2 = vector.load %arg2[%c0_2, %c0_3] : memref<128x32xbf16, #tpu.memory_space<vmem>>, vector<128x32xbf16>
    %cst = arith.constant dense<0.000000e+00> : vector<16x32xf32>
    %3 = tpu.matmul %1, %2, %cst {dimension_numbers = #tpu.dot_dimension_numbers<[1], [0], [0], [1], [0, 0, 1, 1], [], []>} : vector<16x128xbf16>, vector<128x32xbf16>, vector<16x32xf32> -> vector<16x32xf32>
    %c0_4 = arith.constant 0 : index
    %c0_5 = arith.constant 0 : index
    %4 = vector.load %arg3[%c0_4, %c0_5] : memref<1x32xf32, #tpu.memory_space<vmem>>, vector<1x32xf32>
    %5 = vector.broadcast %4 : vector<1x32xf32> to vector<16x32xf32>
    %6 = arith.addf %3, %5 : vector<16x32xf32>
    %7 = vector.extract_strided_slice %6 {offsets = [0, 0], sizes = [16, 16], strides = [1, 1]} : vector<16x32xf32> to vector<16x16xf32>
    %cst_6 = arith.constant 0.000000e+00 : f32
    %8 = vector.broadcast %cst_6 : f32 to vector<16x16xf32>
    %9 = arith.maximumf %7, %8 : vector<16x16xf32>
    %10 = vector.extract_strided_slice %6 {offsets = [0, 16], sizes = [16, 16], strides = [1, 1]} : vector<16x32xf32> to vector<16x16xf32>
    %11 = arith.truncf %9 : vector<16x16xf32> to vector<16x16xbf16>
    %cst_7 = arith.constant dense<0.000000e+00> : vector<16x16xf32>
    %12 = tpu.matmul %11, %11, %cst_7 {dimension_numbers = #tpu.dot_dimension_numbers<[1], [1], [0], [0], [0, 0, 1, 0], [], []>} : vector<16x16xbf16>, vector<16x16xbf16>, vector<16x16xf32> -> vector<16x16xf32>
    %cst_8 = arith.constant 2.500000e-01 : f32
    %13 = vector.broadcast %cst_8 : f32 to vector<16x16xf32>
    %14 = arith.mulf %12, %13 : vector<16x16xf32>
    %cst_9 = arith.constant dense<0xFF800000> : vector<16xf32>
    %15 = vector.multi_reduction <maximumf>, %14, %cst_9 [1] : vector<16x16xf32> to vector<16xf32>
    %16 = vector.shape_cast %15 : vector<16xf32> to vector<16x1xf32>
    %17 = vector.broadcast %16 : vector<16x1xf32> to vector<16x16xf32>
    %18 = arith.subf %14, %17 : vector<16x16xf32>
    %19 = math.exp %18 : vector<16x16xf32>
    %cst_10 = arith.constant dense<0.000000e+00> : vector<16xf32>
    %20 = vector.multi_reduction <add>, %19, %cst_10 [1] : vector<16x16xf32> to vector<16xf32>
    %21 = vector.shape_cast %20 : vector<16xf32> to vector<16x1xf32>
    %22 = tpu.reciprocal %21 {approx = true} : vector<16x1xf32> -> vector<16x1xf32>
    %23 = vector.broadcast %22 : vector<16x1xf32> to vector<16x16xf32>
    %24 = arith.mulf %19, %23 : vector<16x16xf32>
    %25 = arith.truncf %24 : vector<16x16xf32> to vector<16x16xbf16>
    %26 = arith.truncf %10 : vector<16x16xf32> to vector<16x16xbf16>
    %cst_11 = arith.constant dense<0.000000e+00> : vector<16x16xf32>
    %27 = tpu.matmul %25, %26, %cst_11 {dimension_numbers = #tpu.dot_dimension_numbers<[1], [0], [0], [1], [0, 0, 1, 1], [], []>} : vector<16x16xbf16>, vector<16x16xbf16>, vector<16x16xf32> -> vector<16x16xf32>
    %28 = arith.truncf %27 : vector<16x16xf32> to vector<16x16xbf16>
    %c0_12 = arith.constant 0 : index
    %c0_13 = arith.constant 0 : index
    %29 = vector.load %arg4[%c0_12, %c0_13] : memref<16x32xbf16, #tpu.memory_space<vmem>>, vector<16x32xbf16>
    %cst_14 = arith.constant dense<0.000000e+00> : vector<16x32xf32>
    %30 = tpu.matmul %28, %29, %cst_14 {dimension_numbers = #tpu.dot_dimension_numbers<[1], [0], [0], [1], [0, 0, 1, 1], [], []>} : vector<16x16xbf16>, vector<16x32xbf16>, vector<16x32xf32> -> vector<16x32xf32>
    %c0_15 = arith.constant 0 : index
    %c0_16 = arith.constant 0 : index
    %31 = vector.load %arg5[%c0_15, %c0_16] : memref<1x32xf32, #tpu.memory_space<vmem>>, vector<1x32xf32>
    %32 = vector.broadcast %31 : vector<1x32xf32> to vector<16x32xf32>
    %33 = arith.addf %30, %32 : vector<16x32xf32>
    %34 = arith.truncf %33 : vector<16x32xf32> to vector<16x32xbf16>
    %c0_17 = arith.constant 0 : index
    %c0_18 = arith.constant 0 : index
    %35 = vector.load %arg6[%c0_17, %c0_18] : memref<32x128xbf16, #tpu.memory_space<vmem>>, vector<32x128xbf16>
    %cst_19 = arith.constant dense<0.000000e+00> : vector<16x128xf32>
    %36 = tpu.matmul %34, %35, %cst_19 {dimension_numbers = #tpu.dot_dimension_numbers<[1], [0], [0], [1], [0, 0, 1, 1], [], []>} : vector<16x32xbf16>, vector<32x128xbf16>, vector<16x128xf32> -> vector<16x128xf32>
    %c0_20 = arith.constant 0 : index
    %c0_21 = arith.constant 0 : index
    %37 = vector.load %arg7[%c0_20, %c0_21] : memref<128x128xbf16, #tpu.memory_space<vmem>>, vector<128x128xbf16>
    %cst_22 = arith.constant dense<0.000000e+00> : vector<16x128xf32>
    %38 = tpu.matmul %1, %37, %cst_22 {dimension_numbers = #tpu.dot_dimension_numbers<[1], [0], [0], [1], [0, 0, 1, 1], [], []>} : vector<16x128xbf16>, vector<128x128xbf16>, vector<16x128xf32> -> vector<16x128xf32>
    %39 = arith.addf %36, %38 : vector<16x128xf32>
    %c0_23 = arith.constant 0 : index
    %c0_24 = arith.constant 0 : index
    %40 = vector.load %arg8[%c0_23, %c0_24] : memref<1x128xf32, #tpu.memory_space<vmem>>, vector<1x128xf32>
    %41 = vector.broadcast %40 : vector<1x128xf32> to vector<16x128xf32>
    %42 = arith.addf %39, %41 : vector<16x128xf32>
    %cst_25 = arith.constant 0.000000e+00 : f32
    %43 = vector.broadcast %cst_25 : f32 to vector<16x128xf32>
    %44 = arith.maximumf %42, %43 : vector<16x128xf32>
    %c0_26 = arith.constant 0 : index
    %c0_27 = arith.constant 0 : index
    %c0_28 = arith.constant 0 : index
    %45 = vector.load %arg9[%c0_26, %c0_27, %c0_28] : memref<1x16x128xf32, #tpu.memory_space<vmem>>, vector<1x16x128xf32>
    %46 = vector.shape_cast %45 : vector<1x16x128xf32> to vector<16x128xf32>
    %47 = vector.shape_cast %44 : vector<16x128xf32> to vector<1x16x128xf32>
    tpu.vector_store %arg9[%c0_26, %c0_27, %c0_28], %47 {strides = array<i32>} : memref<1x16x128xf32, #tpu.memory_space<vmem>>, vector<1x16x128xf32>,
    return
  }
  func.func @transform_0(%arg0: i32) -> (i32, i32, i32) {
    %c0_i32 = arith.constant 0 : i32
    %c0_i32_0 = arith.constant 0 : i32
    %c0_i32_1 = arith.constant 0 : i32
    return %arg0, %c0_i32, %c0_i32_0 : i32, i32, i32
  }
  func.func @transform_1(%arg0: i32) -> (i32, i32) {
    %c0_i32 = arith.constant 0 : i32
    %c0_i32_0 = arith.constant 0 : i32
    %c0_i32_1 = arith.constant 0 : i32
    return %c0_i32, %c0_i32_0 : i32, i32
  }
  func.func @transform_2(%arg0: i32) -> (i32, i32) {
    %c0_i32 = arith.constant 0 : i32
    %c0_i32_0 = arith.constant 0 : i32
    %c0_i32_1 = arith.constant 0 : i32
    return %c0_i32, %c0_i32_0 : i32, i32
  }
  func.func @transform_3(%arg0: i32) -> (i32, i32) {
    %c0_i32 = arith.constant 0 : i32
    %c0_i32_0 = arith.constant 0 : i32
    %c0_i32_1 = arith.constant 0 : i32
    return %c0_i32, %c0_i32_0 : i32, i32
  }
  func.func @transform_4(%arg0: i32) -> (i32, i32) {
    %c0_i32 = arith.constant 0 : i32
    %c0_i32_0 = arith.constant 0 : i32
    %c0_i32_1 = arith.constant 0 : i32
    return %c0_i32, %c0_i32_0 : i32, i32
  }
  func.func @transform_5(%arg0: i32) -> (i32, i32) {
    %c0_i32 = arith.constant 0 : i32
    %c0_i32_0 = arith.constant 0 : i32
    %c0_i32_1 = arith.constant 0 : i32
    return %c0_i32, %c0_i32_0 : i32, i32
  }
  func.func @transform_6(%arg0: i32) -> (i32, i32) {
    %c0_i32 = arith.constant 0 : i32
    %c0_i32_0 = arith.constant 0 : i32
    %c0_i32_1 = arith.constant 0 : i32
    return %c0_i32, %c0_i32_0 : i32, i32
  }
  func.func @transform_7(%arg0: i32) -> (i32, i32) {
    %c0_i32 = arith.constant 0 : i32
    %c0_i32_0 = arith.constant 0 : i32
    %c0_i32_1 = arith.constant 0 : i32
    return %c0_i32, %c0_i32_0 : i32, i32
  }
  func.func @transform_8(%arg0: i32) -> (i32, i32, i32) {
    %c0_i32 = arith.constant 0 : i32
    %c0_i32_0 = arith.constant 0 : i32
    %c0_i32_1 = arith.constant 0 : i32
    return %arg0, %c0_i32, %c0_i32_0 : i32, i32, i32
  }
}

module attributes {stable_mosaic.version = 11 : i64} {
  func.func @_mm_kernel(%arg0: i32, %arg1: i32, %arg2: i32, %arg3: memref<32x128xbf16, #tpu.memory_space<vmem>>, %arg4: memref<128x128xbf16, #tpu.memory_space<vmem>>, %arg5: memref<1x128xf32, #tpu.memory_space<vmem>>, %arg6: memref<32x128xf32, #tpu.memory_space<vmem>>, %arg7: memref<32x128xf32, #tpu.memory_space<vmem>>) attributes {dimension_semantics = [#tpu.dimension_semantics<parallel>, #tpu.dimension_semantics<parallel>, #tpu.dimension_semantics<arbitrary>], iteration_bounds = array<i64: 1, 1, 1>, scalar_prefetch = 0 : i64, scratch_operands = 1 : i64, tpu.core_type = #tpu.core_type<tc>, window_params = [{transform_indices = @transform_0, window_bounds = array<i64: 32, 128>}, {transform_indices = @transform_1, window_bounds = array<i64: 128, 128>}, {transform_indices = @transform_2, window_bounds = array<i64: 1, 128>}, {transform_indices = @transform_3, window_bounds = array<i64: 32, 128>}]} {
    %c0_i32 = arith.constant 0 : i32
    %0 = arith.cmpi eq, %arg2, %c0_i32 : i32
    %1 = arith.extui %0 : i1 to i32
    %c0_i32_0 = arith.constant 0 : i32
    %2 = arith.cmpi ne, %1, %c0_i32_0 : i32
    scf.if %2 {
      %cst_10 = arith.constant 0.000000e+00 : f32
      %12 = vector.broadcast %cst_10 : f32 to vector<32x128xf32>
      %c0_11 = arith.constant 0 : index
      %c0_12 = arith.constant 0 : index
      %13 = vector.load %arg7[%c0_11, %c0_12] : memref<32x128xf32, #tpu.memory_space<vmem>>, vector<32x128xf32>
      tpu.vector_store %arg7[%c0_11, %c0_12], %12 {strides = array<i32>} : memref<32x128xf32, #tpu.memory_space<vmem>>, vector<32x128xf32>,
    } else {
    }
    %c0 = arith.constant 0 : index
    %c0_1 = arith.constant 0 : index
    %3 = vector.load %arg7[%c0, %c0_1] : memref<32x128xf32, #tpu.memory_space<vmem>>, vector<32x128xf32>
    %c0_2 = arith.constant 0 : index
    %c0_3 = arith.constant 0 : index
    %4 = vector.load %arg3[%c0_2, %c0_3] : memref<32x128xbf16, #tpu.memory_space<vmem>>, vector<32x128xbf16>
    %c0_4 = arith.constant 0 : index
    %c0_5 = arith.constant 0 : index
    %5 = vector.load %arg4[%c0_4, %c0_5] : memref<128x128xbf16, #tpu.memory_space<vmem>>, vector<128x128xbf16>
    %cst = arith.constant dense<0.000000e+00> : vector<32x128xf32>
    %6 = tpu.matmul %4, %5, %cst {dimension_numbers = #tpu.dot_dimension_numbers<[1], [0], [0], [1], [0, 0, 1, 1], [], []>} : vector<32x128xbf16>, vector<128x128xbf16>, vector<32x128xf32> -> vector<32x128xf32>
    %7 = arith.addf %3, %6 : vector<32x128xf32>
    %c0_6 = arith.constant 0 : index
    %c0_7 = arith.constant 0 : index
    %8 = vector.load %arg7[%c0_6, %c0_7] : memref<32x128xf32, #tpu.memory_space<vmem>>, vector<32x128xf32>
    tpu.vector_store %arg7[%c0_6, %c0_7], %7 {strides = array<i32>} : memref<32x128xf32, #tpu.memory_space<vmem>>, vector<32x128xf32>,
    %c0_i32_8 = arith.constant 0 : i32
    %9 = arith.cmpi eq, %arg2, %c0_i32_8 : i32
    %10 = arith.extui %9 : i1 to i32
    %c0_i32_9 = arith.constant 0 : i32
    %11 = arith.cmpi ne, %10, %c0_i32_9 : i32
    scf.if %11 {
      %c0_10 = arith.constant 0 : index
      %c0_11 = arith.constant 0 : index
      %12 = vector.load %arg7[%c0_10, %c0_11] : memref<32x128xf32, #tpu.memory_space<vmem>>, vector<32x128xf32>
      %c0_12 = arith.constant 0 : index
      %c0_13 = arith.constant 0 : index
      %13 = vector.load %arg5[%c0_12, %c0_13] : memref<1x128xf32, #tpu.memory_space<vmem>>, vector<1x128xf32>
      %14 = vector.broadcast %13 : vector<1x128xf32> to vector<32x128xf32>
      %15 = arith.addf %12, %14 : vector<32x128xf32>
      %c0_14 = arith.constant 0 : index
      %c0_15 = arith.constant 0 : index
      %16 = vector.load %arg6[%c0_14, %c0_15] : memref<32x128xf32, #tpu.memory_space<vmem>>, vector<32x128xf32>
      tpu.vector_store %arg6[%c0_14, %c0_15], %15 {strides = array<i32>} : memref<32x128xf32, #tpu.memory_space<vmem>>, vector<32x128xf32>,
    } else {
    }
    return
  }
  func.func @transform_0(%arg0: i32, %arg1: i32, %arg2: i32) -> (i32, i32) {
    %c0_i32 = arith.constant 0 : i32
    return %arg0, %arg2 : i32, i32
  }
  func.func @transform_1(%arg0: i32, %arg1: i32, %arg2: i32) -> (i32, i32) {
    %c0_i32 = arith.constant 0 : i32
    return %arg2, %arg1 : i32, i32
  }
  func.func @transform_2(%arg0: i32, %arg1: i32, %arg2: i32) -> (i32, i32) {
    %c0_i32 = arith.constant 0 : i32
    %c0_i32_0 = arith.constant 0 : i32
    return %c0_i32, %arg1 : i32, i32
  }
  func.func @transform_3(%arg0: i32, %arg1: i32, %arg2: i32) -> (i32, i32) {
    %c0_i32 = arith.constant 0 : i32
    return %arg0, %arg1 : i32, i32
  }
}

module attributes {stable_mosaic.version = 11 : i64} {
  func.func @_conv3x3_kernel(%arg0: i32, %arg1: memref<1x38x64xbf16, #tpu.memory_space<vmem>>, %arg2: memref<576x128xbf16, #tpu.memory_space<vmem>>, %arg3: memref<1x128xf32, #tpu.memory_space<vmem>>, %arg4: memref<1x24x128xf32, #tpu.memory_space<vmem>>) attributes {dimension_semantics = [#tpu.dimension_semantics<parallel>], iteration_bounds = array<i64: 2>, scalar_prefetch = 0 : i64, scratch_operands = 0 : i64, tpu.core_type = #tpu.core_type<tc>, window_params = [{transform_indices = @transform_0, window_bounds = array<i64: 1, 38, 64>}, {pipeline_mode = #tpu.pipeline_mode<synchronous>, transform_indices = @transform_1, window_bounds = array<i64: 576, 128>}, {pipeline_mode = #tpu.pipeline_mode<synchronous>, transform_indices = @transform_2, window_bounds = array<i64: 1, 128>}, {transform_indices = @transform_3, window_bounds = array<i64: 1, 24, 128>}]} {
    %cst = arith.constant 0.000000e+00 : f32
    %0 = vector.broadcast %cst : f32 to vector<24x128xf32>
    %c0 = arith.constant 0 : index
    %c0_0 = arith.constant 0 : index
    %c0_1 = arith.constant 0 : index
    %1 = vector.load %arg1[%c0, %c0_0, %c0_1] : memref<1x38x64xbf16, #tpu.memory_space<vmem>>, vector<1x24x64xbf16>
    %2 = vector.shape_cast %1 : vector<1x24x64xbf16> to vector<24x64xbf16>
    %c0_2 = arith.constant 0 : index
    %c0_3 = arith.constant 0 : index
    %3 = vector.load %arg2[%c0_2, %c0_3] : memref<576x128xbf16, #tpu.memory_space<vmem>>, vector<64x128xbf16>
    %cst_4 = arith.constant dense<0.000000e+00> : vector<24x128xf32>
    %4 = tpu.matmul %2, %3, %cst_4 {dimension_numbers = #tpu.dot_dimension_numbers<[1], [0], [0], [1], [0, 0, 1, 1], [], []>} : vector<24x64xbf16>, vector<64x128xbf16>, vector<24x128xf32> -> vector<24x128xf32>
    %5 = arith.addf %0, %4 : vector<24x128xf32>
    %c0_5 = arith.constant 0 : index
    %c1 = arith.constant 1 : index
    %c0_6 = arith.constant 0 : index
    %6 = vector.load %arg1[%c0_5, %c1, %c0_6] : memref<1x38x64xbf16, #tpu.memory_space<vmem>>, vector<1x24x64xbf16>
    %7 = vector.shape_cast %6 : vector<1x24x64xbf16> to vector<24x64xbf16>
    %c64 = arith.constant 64 : index
    %c0_7 = arith.constant 0 : index
    %8 = vector.load %arg2[%c64, %c0_7] : memref<576x128xbf16, #tpu.memory_space<vmem>>, vector<64x128xbf16>
    %cst_8 = arith.constant dense<0.000000e+00> : vector<24x128xf32>
    %9 = tpu.matmul %7, %8, %cst_8 {dimension_numbers = #tpu.dot_dimension_numbers<[1], [0], [0], [1], [0, 0, 1, 1], [], []>} : vector<24x64xbf16>, vector<64x128xbf16>, vector<24x128xf32> -> vector<24x128xf32>
    %10 = arith.addf %5, %9 : vector<24x128xf32>
    %c0_9 = arith.constant 0 : index
    %c2 = arith.constant 2 : index
    %c0_10 = arith.constant 0 : index
    %11 = vector.load %arg1[%c0_9, %c2, %c0_10] : memref<1x38x64xbf16, #tpu.memory_space<vmem>>, vector<1x24x64xbf16>
    %12 = vector.shape_cast %11 : vector<1x24x64xbf16> to vector<24x64xbf16>
    %c128 = arith.constant 128 : index
    %c0_11 = arith.constant 0 : index
    %13 = vector.load %arg2[%c128, %c0_11] : memref<576x128xbf16, #tpu.memory_space<vmem>>, vector<64x128xbf16>
    %cst_12 = arith.constant dense<0.000000e+00> : vector<24x128xf32>
    %14 = tpu.matmul %12, %13, %cst_12 {dimension_numbers = #tpu.dot_dimension_numbers<[1], [0], [0], [1], [0, 0, 1, 1], [], []>} : vector<24x64xbf16>, vector<64x128xbf16>, vector<24x128xf32> -> vector<24x128xf32>
    %15 = arith.addf %10, %14 : vector<24x128xf32>
    %c0_13 = arith.constant 0 : index
    %c6 = arith.constant 6 : index
    %c0_14 = arith.constant 0 : index
    %16 = vector.load %arg1[%c0_13, %c6, %c0_14] : memref<1x38x64xbf16, #tpu.memory_space<vmem>>, vector<1x24x64xbf16>
    %17 = vector.shape_cast %16 : vector<1x24x64xbf16> to vector<24x64xbf16>
    %c192 = arith.constant 192 : index
    %c0_15 = arith.constant 0 : index
    %18 = vector.load %arg2[%c192, %c0_15] : memref<576x128xbf16, #tpu.memory_space<vmem>>, vector<64x128xbf16>
    %cst_16 = arith.constant dense<0.000000e+00> : vector<24x128xf32>
    %19 = tpu.matmul %17, %18, %cst_16 {dimension_numbers = #tpu.dot_dimension_numbers<[1], [0], [0], [1], [0, 0, 1, 1], [], []>} : vector<24x64xbf16>, vector<64x128xbf16>, vector<24x128xf32> -> vector<24x128xf32>
    %20 = arith.addf %15, %19 : vector<24x128xf32>
    %c0_17 = arith.constant 0 : index
    %c7 = arith.constant 7 : index
    %c0_18 = arith.constant 0 : index
    %21 = vector.load %arg1[%c0_17, %c7, %c0_18] : memref<1x38x64xbf16, #tpu.memory_space<vmem>>, vector<1x24x64xbf16>
    %22 = vector.shape_cast %21 : vector<1x24x64xbf16> to vector<24x64xbf16>
    %c256 = arith.constant 256 : index
    %c0_19 = arith.constant 0 : index
    %23 = vector.load %arg2[%c256, %c0_19] : memref<576x128xbf16, #tpu.memory_space<vmem>>, vector<64x128xbf16>
    %cst_20 = arith.constant dense<0.000000e+00> : vector<24x128xf32>
    %24 = tpu.matmul %22, %23, %cst_20 {dimension_numbers = #tpu.dot_dimension_numbers<[1], [0], [0], [1], [0, 0, 1, 1], [], []>} : vector<24x64xbf16>, vector<64x128xbf16>, vector<24x128xf32> -> vector<24x128xf32>
    %25 = arith.addf %20, %24 : vector<24x128xf32>
    %c0_21 = arith.constant 0 : index
    %c8 = arith.constant 8 : index
    %c0_22 = arith.constant 0 : index
    %26 = vector.load %arg1[%c0_21, %c8, %c0_22] : memref<1x38x64xbf16, #tpu.memory_space<vmem>>, vector<1x24x64xbf16>
    %27 = vector.shape_cast %26 : vector<1x24x64xbf16> to vector<24x64xbf16>
    %c320 = arith.constant 320 : index
    %c0_23 = arith.constant 0 : index
    %28 = vector.load %arg2[%c320, %c0_23] : memref<576x128xbf16, #tpu.memory_space<vmem>>, vector<64x128xbf16>
    %cst_24 = arith.constant dense<0.000000e+00> : vector<24x128xf32>
    %29 = tpu.matmul %27, %28, %cst_24 {dimension_numbers = #tpu.dot_dimension_numbers<[1], [0], [0], [1], [0, 0, 1, 1], [], []>} : vector<24x64xbf16>, vector<64x128xbf16>, vector<24x128xf32> -> vector<24x128xf32>
    %30 = arith.addf %25, %29 : vector<24x128xf32>
    %c0_25 = arith.constant 0 : index
    %c12 = arith.constant 12 : index
    %c0_26 = arith.constant 0 : index
    %31 = vector.load %arg1[%c0_25, %c12, %c0_26] : memref<1x38x64xbf16, #tpu.memory_space<vmem>>, vector<1x24x64xbf16>
    %32 = vector.shape_cast %31 : vector<1x24x64xbf16> to vector<24x64xbf16>
    %c384 = arith.constant 384 : index
    %c0_27 = arith.constant 0 : index
    %33 = vector.load %arg2[%c384, %c0_27] : memref<576x128xbf16, #tpu.memory_space<vmem>>, vector<64x128xbf16>
    %cst_28 = arith.constant dense<0.000000e+00> : vector<24x128xf32>
    %34 = tpu.matmul %32, %33, %cst_28 {dimension_numbers = #tpu.dot_dimension_numbers<[1], [0], [0], [1], [0, 0, 1, 1], [], []>} : vector<24x64xbf16>, vector<64x128xbf16>, vector<24x128xf32> -> vector<24x128xf32>
    %35 = arith.addf %30, %34 : vector<24x128xf32>
    %c0_29 = arith.constant 0 : index
    %c13 = arith.constant 13 : index
    %c0_30 = arith.constant 0 : index
    %36 = vector.load %arg1[%c0_29, %c13, %c0_30] : memref<1x38x64xbf16, #tpu.memory_space<vmem>>, vector<1x24x64xbf16>
    %37 = vector.shape_cast %36 : vector<1x24x64xbf16> to vector<24x64xbf16>
    %c448 = arith.constant 448 : index
    %c0_31 = arith.constant 0 : index
    %38 = vector.load %arg2[%c448, %c0_31] : memref<576x128xbf16, #tpu.memory_space<vmem>>, vector<64x128xbf16>
    %cst_32 = arith.constant dense<0.000000e+00> : vector<24x128xf32>
    %39 = tpu.matmul %37, %38, %cst_32 {dimension_numbers = #tpu.dot_dimension_numbers<[1], [0], [0], [1], [0, 0, 1, 1], [], []>} : vector<24x64xbf16>, vector<64x128xbf16>, vector<24x128xf32> -> vector<24x128xf32>
    %40 = arith.addf %35, %39 : vector<24x128xf32>
    %c0_33 = arith.constant 0 : index
    %c14 = arith.constant 14 : index
    %c0_34 = arith.constant 0 : index
    %41 = vector.load %arg1[%c0_33, %c14, %c0_34] : memref<1x38x64xbf16, #tpu.memory_space<vmem>>, vector<1x24x64xbf16>
    %42 = vector.shape_cast %41 : vector<1x24x64xbf16> to vector<24x64xbf16>
    %c512 = arith.constant 512 : index
    %c0_35 = arith.constant 0 : index
    %43 = vector.load %arg2[%c512, %c0_35] : memref<576x128xbf16, #tpu.memory_space<vmem>>, vector<64x128xbf16>
    %cst_36 = arith.constant dense<0.000000e+00> : vector<24x128xf32>
    %44 = tpu.matmul %42, %43, %cst_36 {dimension_numbers = #tpu.dot_dimension_numbers<[1], [0], [0], [1], [0, 0, 1, 1], [], []>} : vector<24x64xbf16>, vector<64x128xbf16>, vector<24x128xf32> -> vector<24x128xf32>
    %45 = arith.addf %40, %44 : vector<24x128xf32>
    %c0_37 = arith.constant 0 : index
    %c0_38 = arith.constant 0 : index
    %46 = vector.load %arg3[%c0_37, %c0_38] : memref<1x128xf32, #tpu.memory_space<vmem>>, vector<1x128xf32>
    %47 = vector.broadcast %46 : vector<1x128xf32> to vector<24x128xf32>
    %48 = arith.addf %45, %47 : vector<24x128xf32>
    %cst_39 = arith.constant 0.000000e+00 : f32
    %49 = vector.broadcast %cst_39 : f32 to vector<24x128xf32>
    %50 = arith.maximumf %48, %49 : vector<24x128xf32>
    %c0_40 = arith.constant 0 : index
    %c0_41 = arith.constant 0 : index
    %c0_42 = arith.constant 0 : index
    %51 = vector.load %arg4[%c0_40, %c0_41, %c0_42] : memref<1x24x128xf32, #tpu.memory_space<vmem>>, vector<1x24x128xf32>
    %52 = vector.shape_cast %51 : vector<1x24x128xf32> to vector<24x128xf32>
    %53 = vector.shape_cast %50 : vector<24x128xf32> to vector<1x24x128xf32>
    tpu.vector_store %arg4[%c0_40, %c0_41, %c0_42], %53 {strides = array<i32>} : memref<1x24x128xf32, #tpu.memory_space<vmem>>, vector<1x24x128xf32>,
    return
  }
  func.func @transform_0(%arg0: i32) -> (i32, i32, i32) {
    %c0_i32 = arith.constant 0 : i32
    %c0_i32_0 = arith.constant 0 : i32
    %c0_i32_1 = arith.constant 0 : i32
    return %arg0, %c0_i32, %c0_i32_0 : i32, i32, i32
  }
  func.func @transform_1(%arg0: i32) -> (i32, i32) {
    %c0_i32 = arith.constant 0 : i32
    %c0_i32_0 = arith.constant 0 : i32
    %c0_i32_1 = arith.constant 0 : i32
    return %c0_i32, %c0_i32_0 : i32, i32
  }
  func.func @transform_2(%arg0: i32) -> (i32, i32) {
    %c0_i32 = arith.constant 0 : i32
    %c0_i32_0 = arith.constant 0 : i32
    %c0_i32_1 = arith.constant 0 : i32
    return %c0_i32, %c0_i32_0 : i32, i32
  }
  func.func @transform_3(%arg0: i32) -> (i32, i32, i32) {
    %c0_i32 = arith.constant 0 : i32
    %c0_i32_0 = arith.constant 0 : i32
    %c0_i32_1 = arith.constant 0 : i32
    return %arg0, %c0_i32, %c0_i32_0 : i32, i32, i32
  }
}

</mosaic_0001>

<bundles_post_ra>
// kernel: base_ocnet_forward.6
= control target key start
LH: loop header
LB: loop body
LE: loop exit
PB: predicated region body
PF: predicated region fallthrough
CT: control target
= control target key end

     0   :  { %s1020_s12 = smov 0   ;;  %s1022_s13 = smov 0   ;;  %s1199_s0 = inlined_call_operand.vmem [shape: bf16[32,256], index: 0, kind: input, shape index: {}]   ;;  %s1200_s1 = inlined_call_operand.vmem [shape: bf16[256,256], index: 1, kind: input, shape index: {}]   ;;  %s1201_s2 = inlined_call_operand.vmem [shape: f32[1,256], index: 2, kind: input, shape index: {}]   ;;  %s1202_s3 = inlined_call_operand.vmem [shape: f32[32,256], index: 3, kind: output, shape index: {}]  }
   0x1   :  { %s1024_s14 = smov 0   ;;  %s1026_s15 = smov 0  }
   0x2   :  { %s1028_s16 = smov 0  }
   0x3 LB: > { %s28_s17 = sadd.s32 1, %s994_s15  ;;  %s819_s18 = sadd.s32 4294967295, %s998_s16   ;;  %s998_s16 = sphi %s1028_s16, %s13_s16   ;;  %s994_s15 = sphi %s1026_s15, %s1207_s15   ;;  %s990_s14 = sphi %s1024_s14, %s1206_s14   ;;  %s986_s13 = sphi %s1022_s13, %s1205_s13   ;;  %s982_s12 = sphi %s1020_s12, %s1204_s12  }
   0x4   : > { %p30_p0 = scmp.ge.s32.totalorder %s28_s17, 2  ;;  %p76_p1 = scmp.ne.s32.totalorder %s986_s13, %s982_s12 }
   0x5   : > { %p77_p2 = scmp.eq.s32.totalorder %s998_s16, 0  ;;  %p134_p4 = scmp.eq.s32.totalorder %s819_s18, 1 }
   0x6   : > { %s1209_s17 = smov (%p30_p0, %s28_s17), 0  ;;  %s69_s20 = sadd.s32 1, %s986_s13 }
   0x7   : > { %p78_p3 = por %p77_p2, %p76_p1  ;;  %s65_s19 = ssub.s32 %s994_s15, %s1209_s17 }
   0x8   : > { %p67_p5 = scmp.eq.s32.totalorder %s65_s19, 0  ;;  %p1055_p6 = por %p134_p4, %p76_p1 }
   0x9   : > { %p823_p7 = scmp.ge.s32.totalorder %s998_s16, 2 }
   0xa   : > { %s1060_s22 = scalar_select %p67_p5, %s986_s13, %s69_s20  }
   0xb   : > { %171 = sbr.rel (%p823_p7) target bundleno = 43 (0x2b), region = 20 }
  0x12   : > { %174 = sbr.rel (!%p78_p3) target bundleno = 43 (0x2b), region = 24  ;;  %s176_s23 = sand.u32 (%p78_p3), 1, %s986_s13  }
  0x13   : > { %s825_s24 = sshll.u32 (%p78_p3), %s994_s15, 2  ;;  %s824_s25 = sshll.u32 (%p78_p3), %s176_s23, 7 }
  0x14   : > { %s1068_s28 = scalar_lea.vmem (%p78_p3), %s1200_s1, %s825_s24  ;;  %s1072_s29 = scalar_lea.vmem (%p78_p3), [#allocation3], %s824_s25 }
  0x15   : > { %v199_v0 = vld [vmem:[%s1068_s28] sm:$0xf] (%p78_p3)  ;;  %v201_v1 = vld [vmem:[%s1068_s28 + $0x8] sm:$0xf] (%p78_p3)  ;;  %v203_v2 = vld [vmem:[%s1068_s28 + $0x10] sm:$0xf] (%p78_p3) }
  0x16   : > { %200 = vst [vmem:[%s1072_s29] sm:$0xf] (%p78_p3), %v199_v0  ;;  %202 = vst [vmem:[%s1072_s29 + $0x4] sm:$0xf] (%p78_p3), %v201_v1  ;;  %v205_v3 = vld [vmem:[%s1068_s28 + $0x18] sm:$0xf] (%p78_p3) }
  0x17   : > { %v207_v4 = vld [vmem:[%s1068_s28 + $0x20] sm:$0xf] (%p78_p3)  ;;  %204 = vst [vmem:[%s1072_s29 + $0x8] sm:$0xf] (%p78_p3), %v203_v2  ;;  %206 = vst [vmem:[%s1072_s29 + $0xc] sm:$0xf] (%p78_p3), %v205_v3 }
  0x18   : > { %208 = vst [vmem:[%s1072_s29 + $0x10] sm:$0xf] (%p78_p3), %v207_v4  ;;  %v209_v5 = vld [vmem:[%s1068_s28 + $0x28] sm:$0xf] (%p78_p3)  ;;  %v211_v6 = vld [vmem:[%s1068_s28 + $0x30] sm:$0xf] (%p78_p3) }
  0x19   : > { %v213_v7 = vld [vmem:[%s1068_s28 + $0x38] sm:$0xf]  ;;  %210 = vst [vmem:[%s1072_s29 + $0x14] sm:$0xf] %v209_v5  ;;  %212 = vst [vmem:[%s1072_s29 + $0x18] sm:$0xf] %v211_v6 }
  0x1a   : > { %214 = vst [vmem:[%s1072_s29 + $0x1c] sm:$0xf] %v213_v7  ;;  %v215_v8 = vld [vmem:[%s1068_s28 + $0x40] sm:$0xf]  ;;  %v217_v9 = vld [vmem:[%s1068_s28 + $0x48] sm:$0xf] }
  0x1b   : > { %v219_v10 = vld [vmem:[%s1068_s28 + $0x50] sm:$0xf]  ;;  %216 = vst [vmem:[%s1072_s29 + $0x20] sm:$0xf] %v215_v8  ;;  %218 = vst [vmem:[%s1072_s29 + $0x24] sm:$0xf] %v217_v9 }
  0x1c   : > { %220 = vst [vmem:[%s1072_s29 + $0x28] sm:$0xf] %v219_v10  ;;  %v221_v11 = vld [vmem:[%s1068_s28 + $0x58] sm:$0xf]  ;;  %v223_v12 = vld [vmem:[%s1068_s28 + $0x60] sm:$0xf] }
  0x1d   : > { %v225_v13 = vld [vmem:[%s1068_s28 + $0x68] sm:$0xf]  ;;  %222 = vst [vmem:[%s1072_s29 + $0x2c] sm:$0xf] %v221_v11  ;;  %224 = vst [vmem:[%s1072_s29 + $0x30] sm:$0xf] %v223_v12 }
  0x1e   : > { %226 = vst [vmem:[%s1072_s29 + $0x34] sm:$0xf] %v225_v13  ;;  %v227_v14 = vld [vmem:[%s1068_s28 + $0x70] sm:$0xf]  ;;  %v229_v15 = vld [vmem:[%s1068_s28 + $0x78] sm:$0xf] }
  0x1f   : > { %v231_v16 = vld [vmem:[%s1068_s28 + $0x80] sm:$0xf]  ;;  %228 = vst [vmem:[%s1072_s29 + $0x38] sm:$0xf] %v227_v14  ;;  %230 = vst [vmem:[%s1072_s29 + $0x3c] sm:$0xf] %v229_v15 }
  0x20   : > { %232 = vst [vmem:[%s1072_s29 + $0x40] sm:$0xf] %v231_v16  ;;  %v233_v17 = vld [vmem:[%s1068_s28 + $0x88] sm:$0xf]  ;;  %v235_v18 = vld [vmem:[%s1068_s28 + $0x90] sm:$0xf] }
  0x21   : > { %v237_v19 = vld [vmem:[%s1068_s28 + $0x98] sm:$0xf]  ;;  %234 = vst [vmem:[%s1072_s29 + $0x44] sm:$0xf] %v233_v17  ;;  %236 = vst [vmem:[%s1072_s29 + $0x48] sm:$0xf] %v235_v18 }
  0x22   : > { %238 = vst [vmem:[%s1072_s29 + $0x4c] sm:$0xf] %v237_v19  ;;  %v239_v20 = vld [vmem:[%s1068_s28 + $0xa0] sm:$0xf]  ;;  %v241_v21 = vld [vmem:[%s1068_s28 + $0xa8] sm:$0xf] }
  0x23   : > { %v243_v22 = vld [vmem:[%s1068_s28 + $0xb0] sm:$0xf]  ;;  %240 = vst [vmem:[%s1072_s29 + $0x50] sm:$0xf] %v239_v20  ;;  %242 = vst [vmem:[%s1072_s29 + $0x54] sm:$0xf] %v241_v21 }
  0x24   : > { %244 = vst [vmem:[%s1072_s29 + $0x58] sm:$0xf] %v243_v22  ;;  %v245_v23 = vld [vmem:[%s1068_s28 + $0xb8] sm:$0xf]  ;;  %v247_v24 = vld [vmem:[%s1068_s28 + $0xc0] sm:$0xf] }
  0x25   : > { %v249_v25 = vld [vmem:[%s1068_s28 + $0xc8] sm:$0xf]  ;;  %246 = vst [vmem:[%s1072_s29 + $0x5c] sm:$0xf] %v245_v23  ;;  %248 = vst [vmem:[%s1072_s29 + $0x60] sm:$0xf] %v247_v24 }
  0x26   : > { %250 = vst [vmem:[%s1072_s29 + $0x64] sm:$0xf] %v249_v25  ;;  %v251_v26 = vld [vmem:[%s1068_s28 + $0xd0] sm:$0xf]  ;;  %v253_v27 = vld [vmem:[%s1068_s28 + $0xd8] sm:$0xf] }
  0x27   : > { %v255_v28 = vld [vmem:[%s1068_s28 + $0xe0] sm:$0xf]  ;;  %252 = vst [vmem:[%s1072_s29 + $0x68] sm:$0xf] %v251_v26  ;;  %254 = vst [vmem:[%s1072_s29 + $0x6c] sm:$0xf] %v253_v27 }
  0x28   : > { %256 = vst [vmem:[%s1072_s29 + $0x70] sm:$0xf] %v255_v28  ;;  %v257_v29 = vld [vmem:[%s1068_s28 + $0xe8] sm:$0xf]  ;;  %v259_v30 = vld [vmem:[%s1068_s28 + $0xf0] sm:$0xf] }
  0x29   : > { %v261_v31 = vld [vmem:[%s1068_s28 + $0xf8] sm:$0xf]  ;;  %258 = vst [vmem:[%s1072_s29 + $0x74] sm:$0xf] %v257_v29  ;;  %260 = vst [vmem:[%s1072_s29 + $0x78] sm:$0xf] %v259_v30 }
  0x2a   : > { %262 = vst [vmem:[%s1072_s29 + $0x7c] sm:$0xf] %v261_v31 }
  0x2b PF: > { %p826_p8 = scmp.ge.s32.totalorder %s998_s16, 1  ;;  %p354_p9 = scmp.lt.s32.totalorder %s998_s16, 3 }
  0x2d   : > { %p355_p10 = pnand %p826_p8, %p354_p9 }
  0x2e   : > { %s361_s30 = sand.u32 (!%p355_p10), 1, %s982_s12   ;;  %v956_v32 = vld [vmem:[%s1199_s0 + $0x4] ss:$8 sps:$4 sm:$0xff] (!%p355_p10)   ;;  %v959_v33 = vld [vmem:[%s1199_s0 + $0x14] ss:$8 sps:$4 sm:$0xff] (!%p355_p10)   ;;  %p409_p11 = scmp.lt.s32.totalorder (!%p355_p10), %s990_s14, 1 }
  0x2f   : > { %358 = sbr.rel (%p355_p10) target bundleno = 312 (0x138), region = 69  ;;  %s827_s4 = sshll.u32 (!%p355_p10), %s361_s30, 7  ;;  %610 = vmatprep.mubr.bf16.mxu0 (!%p355_p10), %v956_v32  ;;  %618 = vmatprep.mubr.bf16.mxu1 (!%p355_p10), %v959_v33  ;;  %v954_v50 = vld [vmem:[%s1199_s0] ss:$8 sps:$4 sm:$0xff] (!%p355_p10)   ;;  %v957_v51 = vld [vmem:[%s1199_s0 + $0x10] ss:$8 sps:$4 sm:$0xff] (!%p355_p10)  }
  0x30   : > { %s1147_s9 = scalar_lea.vmem (!%p355_p10), [#allocation3], %s827_s4  ;;  %s828_s26 = sshll.u32 (!%p355_p10), %s361_s30, 5 }
  0x31   : > { %v938_v34 = vld [vmem:[%s1147_s9 + $0x40] sm:$0xff] (!%p355_p10)   ;;  %v940_v36 = vld [vmem:[%s1147_s9 + $0x48] sm:$0xff] (!%p355_p10)   ;;  %v942_v38 = vld [vmem:[%s1147_s9 + $0x50] sm:$0xff] (!%p355_p10)   ;;  %s395_s27 = scalar_lea.vmem (!%p355_p10), [#allocation4], %s828_s26 }
  0x32   : > { %v939_v35 = vld [vmem:[%s1147_s9] sm:$0xff] (!%p355_p10)   ;;  %854 = vmatprep.subr.bf16.mxu0 (!%p355_p10), %v938_v34  ;;  %882 = vmatprep.subr.bf16.mxu1 (!%p355_p10), %v938_v34  ;;  %v941_v37 = vld [vmem:[%s1147_s9 + $0x8] sm:$0xff] (!%p355_p10)   ;;  %v943_v39 = vld [vmem:[%s1147_s9 + $0x10] sm:$0xff] (!%p355_p10)  }
  0x33   : > { %855 = vmatpush3.bf16.msra.mxu0 (!%p355_p10), %v939_v35  ;;  %890 = vmatpush3.bf16.msra.mxu1 (!%p355_p10), %v939_v35  ;;  %v944_v40 = vld [vmem:[%s1147_s9 + $0x58] sm:$0xff] (!%p355_p10)   ;;  %v946_v42 = vld [vmem:[%s1147_s9 + $0x60] sm:$0xff] (!%p355_p10)   ;;  %v948_v44 = vld [vmem:[%s1147_s9 + $0x68] sm:$0xff] (!%p355_p10)  }
  0x34   : > { %856 = vmatprep.subr.bf16.mxu0 (!%p355_p10), %v940_v36  ;;  %883 = vmatprep.subr.bf16.mxu1 (!%p355_p10), %v940_v36  ;;  %v945_v41 = vld [vmem:[%s1147_s9 + $0x18] sm:$0xff] (!%p355_p10)   ;;  %v947_v43 = vld [vmem:[%s1147_s9 + $0x20] sm:$0xff] (!%p355_p10)   ;;  %v949_v45 = vld [vmem:[%s1147_s9 + $0x28] sm:$0xff] (!%p355_p10)  }
  0x35   : > { %v950_v46 = vld [vmem:[%s1147_s9 + $0x70] sm:$0xff] (!%p355_p10)   ;;  %v952_v48 = vld [vmem:[%s1147_s9 + $0x78] sm:$0xff] (!%p355_p10)  }
  0x36   : > { %v951_v47 = vld [vmem:[%s1147_s9 + $0x30] sm:$0xff]   ;;  %v953_v49 = vld [vmem:[%s1147_s9 + $0x38] sm:$0xff]   ;;  %s410_s20 = scalar_select %p409_p11, %s990_s14, 1 }
  0x37   : > { %857 = vmatpush3.bf16.msra.mxu0 %v941_v37  ;;  %891 = vmatpush3.bf16.msra.mxu1 %v941_v37  ;;  %s851_s12 = sshll.u32 (%p1055_p6), %s990_s14, 3 }
  0x38   : > { %858 = vmatprep.subr.bf16.mxu0 %v942_v38  ;;  %884 = vmatprep.subr.bf16.mxu1 %v942_v38  ;;  %s411_s25 = scalar_lea.vmem %s1201_s2, %s410_s20  ;;  %s672_s30 = scalar_lea.vmem (%p1055_p6), %s1202_s3, %s851_s12 }
  0x39   : > { %v849_v55 = vld [vmem:[%s411_s25] ss:$0 sm:$0xff] }
  0x3b   : > { %859 = vmatpush3.bf16.msra.mxu0 %v943_v39  ;;  %892 = vmatpush3.bf16.msra.mxu1 %v943_v39 }
  0x3c   : > { %860 = vmatprep.subr.bf16.mxu0 %v944_v40  ;;  %885 = vmatprep.subr.bf16.mxu1 %v944_v40 }
  0x3f   : > { %861 = vmatpush3.bf16.msra.mxu0 %v945_v41  ;;  %893 = vmatpush3.bf16.msra.mxu1 %v945_v41 }
  0x40   : > { %862 = vmatprep.subr.bf16.mxu0 %v946_v42  ;;  %886 = vmatprep.subr.bf16.mxu1 %v946_v42 }
  0x43   : > { %863 = vmatpush3.bf16.msra.mxu0 %v947_v43  ;;  %894 = vmatpush3.bf16.msra.mxu1 %v947_v43 }
  0x44   : > { %864 = vmatprep.subr.bf16.mxu0 %v948_v44  ;;  %887 = vmatprep.subr.bf16.mxu1 %v948_v44 }
  0x47   : > { %865 = vmatpush3.bf16.msra.mxu0 %v949_v45  ;;  %895 = vmatpush3.bf16.msra.mxu1 %v949_v45 }
  0x48   : > { %866 = vmatprep.subr.bf16.mxu0 %v950_v46  ;;  %888 = vmatprep.subr.bf16.mxu1 %v950_v46 }
  0x4b   : > { %867 = vmatpush3.bf16.msra.mxu0 %v951_v47  ;;  %896 = vmatpush3.bf16.msra.mxu1 %v951_v47 }
  0x4c   : > { %868 = vmatprep.subr.bf16.mxu0 %v952_v48  ;;  %889 = vmatprep.subr.bf16.mxu1 %v952_v48 }
  0x4f   : > { %869 = vmatpush3.bf16.msra.mxu0 %v953_v49  ;;  %897 = vmatpush3.bf16.msra.mxu1 %v953_v49 }
  0x52   : > { %611 = vmatmul.mubr.bf16.vlgmr.msra.gmra.mrb[0].mxu0 %v954_v50  ;;  %619 = vmatmul.mubr.bf16.vlgmr.msra.gmra.mrb[0].mxu1 %v957_v51 }
 0x125   : > { %v870_v52 = vpop.f32.mrb[0].mxu0  ;;  %v876_v53 = vpop.f32.mrb[0].mxu1 }
 0x126   : > { %v871_v54 = vpop.f32.mrb[1].mxu0  ;;  %v877_v56 = vpop.f32.mrb[1].mxu1 }
 0x127   : > { %v872_v57 = vadd.f32 %v871_v54, %v870_v52  ;;  %v878_v58 = vadd.f32 %v877_v56, %v876_v53  ;;  %v873_v59 = vpop.f32.mrb[2].mxu0  ;;  %v879_v60 = vpop.f32.mrb[2].mxu1 }
 0x128   : > { %v874_v61 = vpop.f32.mrb[3].mxu0  ;;  %v880_v62 = vpop.f32.mrb[3].mxu1 }
 0x129   : > { %v649_v63 = vadd.f32 %v872_v57, %v849_v55  ;;  %v651_v0 = vadd.f32 %v878_v58, %v849_v55  ;;  %v875_v1 = vadd.f32 %v874_v61, %v873_v59  ;;  %v881_v2 = vadd.f32 %v880_v62, %v879_v60  ;;  %667 = sbr.rel (!%p1055_p6) target bundleno = 312 (0x138), region = 85 }
 0x12b   : > { %v653_v3 = vmax.f32 %v649_v63, 0.0  ;;  %v655_v4 = vmax.f32 %v651_v0, 0.0  ;;  %v650_v5 = vadd.f32 %v875_v1, %v849_v55  ;;  %v652_v6 = vadd.f32 %v881_v2, %v849_v55 }
 0x12d   : > { %657 = vst [vmem:[%s395_s27] sm:$0xff] %v653_v3  ;;  %659 = vst [vmem:[%s395_s27 + $0x10] sm:$0xff] %v655_v4  ;;  %v654_v7 = vmax.f32 %v650_v5, 0.0  ;;  %v656_v8 = vmax.f32 %v652_v6, 0.0 }
 0x12f   : > { %658 = vst [vmem:[%s395_s27 + $0x8] sm:$0xff] %v654_v7  ;;  %660 = vst [vmem:[%s395_s27 + $0x18] sm:$0xff] %v656_v8 }
 0x134   : > { %v706_v9 = vld [vmem:[%s395_s27] sm:$0xff]  ;;  %v710_v11 = vld [vmem:[%s395_s27 + $0x10] sm:$0xff] }
 0x135   : > { %707 = vst [vmem:[%s672_s30] sm:$0xff] %v706_v9  ;;  %711 = vst [vmem:[%s672_s30 + $0x20] sm:$0xff] %v710_v11 }
 0x136   : > { %v708_v10 = vld [vmem:[%s395_s27 + $0x8] sm:$0xff]  ;;  %v712_v12 = vld [vmem:[%s395_s27 + $0x18] sm:$0xff] }
 0x137   : > { %709 = vst [vmem:[%s672_s30 + $0x10] sm:$0xff] %v708_v10  ;;  %713 = vst [vmem:[%s672_s30 + $0x30] sm:$0xff] %v712_v12 }
 0x138 PF: > { %s13_s16 = sadd.s32 1, %s998_s16   ;;  %s1204_s12 = smov %s986_s13 }
 0x139   : > { %p10_p12 = scmp.ge.s32.totalorder %s13_s16, 4   ;;  %s1205_s13 = smov %s1060_s22 }
 0x13a   : > { %s1206_s14 = smov %s994_s15  ;;  %s1207_s15 = smov %s1209_s17 }
 0x13b   :  { %12 = sbr.rel (!%p10_p12) target bundleno = 3 (0x3), region = 160 }

// kernel: base_ocnet_forward.9
= control target key start
LH: loop header
LB: loop body
LE: loop exit
PB: predicated region body
PF: predicated region fallthrough
CT: control target
= control target key end

     0   :  { %s1900_s12 = smov 0   ;;  %s2208_s0 = inlined_call_operand.vmem [shape: bf16[2,38,128], index: 0, kind: input, shape index: {}]   ;;  %s2209_s1 = inlined_call_operand.vmem [shape: bf16[1152,128], index: 1, kind: input, shape index: {}]   ;;  %s2210_s2 = inlined_call_operand.vmem [shape: f32[1,128], index: 2, kind: input, shape index: {}]   ;;  %s2211_s3 = inlined_call_operand.vmem [shape: f32[2,24,128], index: 3, kind: output, shape index: {}]  }
   0x1 LB: > { %s1412_s13 = sadd.s32 4294967295, %s1878_s12   ;;  %p1416_p0 = scmp.ge.s32.totalorder %s1878_s12, 1  ;;  %s1878_s12 = sphi %s1900_s12, %s13_s12  }
   0x2   : > { %p137_p1 = scmp.lt.s32.totalorder %s1878_s12, 3 }
   0x4   : > { %p138_p2 = pnand %p1416_p0, %p137_p1 }
   0x5   : > { %v1787_v0 = vld [vmem:[%s2209_s1 + $0x40] sm:$0xff] (!%p138_p2)   ;;  %p161_p3 = scmp.lt.s32.totalorder (!%p138_p2), %s1412_s13, 1  ;;  %v1789_v2 = vld [vmem:[%s2209_s1 + $0x48] sm:$0xff] (!%p138_p2)   ;;  %v1791_v4 = vld [vmem:[%s2209_s1 + $0x50] sm:$0xff] (!%p138_p2)   ;;  %vm218_vm0 = vsmask.f32 (!%p138_p2), 7424 }
   0x6   : > { %141 = sbr.rel (%p138_p2) target bundleno = 388 (0x184), region = 32  ;;  %v1788_v1 = vld [vmem:[%s2209_s1] sm:$0xff] (!%p138_p2)   ;;  %1597 = vmatprep.subr.bf16.mxu0 (!%p138_p2), %v1787_v0  ;;  %v1790_v3 = vld [vmem:[%s2209_s1 + $0x8] sm:$0xff] (!%p138_p2)   ;;  %v1792_v5 = vld [vmem:[%s2209_s1 + $0x10] sm:$0xff] (!%p138_p2)   ;;  %vm451_vm1 = vcmask (!%p138_p2), 1046528   ;;  %vm580_vm2 = vcmask (!%p138_p2), 1044480  }
   0x7   : > { %1617 = vmatprep.subr.bf16.mxu1 (!%p138_p2), %v1788_v1  ;;  %1598 = vmatpush3.bf16.msra.mxu0 (!%p138_p2), %v1787_v0  ;;  %v1793_v6 = vld [vmem:[%s2209_s1 + $0x58] sm:$0xff] (!%p138_p2)   ;;  %v1795_v8 = vld [vmem:[%s2209_s1 + $0x60] sm:$0xff] (!%p138_p2)   ;;  %v1797_v10 = vld [vmem:[%s2209_s1 + $0x68] sm:$0xff] (!%p138_p2)   ;;  %vm705_vm3 = vsmask.f32 (!%p138_p2), 4352  ;;  %vm973_vm4 = vcmask (!%p138_p2), 1045504  }
   0x8   : > { %1618 = vmatpush3.bf16.msra.mxu1 (!%p138_p2), %v1788_v1  ;;  %1599 = vmatprep.subr.bf16.mxu0 (!%p138_p2), %v1789_v2  ;;  %v1794_v7 = vld [vmem:[%s2209_s1 + $0x18] sm:$0xff] (!%p138_p2)   ;;  %v1796_v9 = vld [vmem:[%s2209_s1 + $0x20] sm:$0xff] (!%p138_p2)   ;;  %v1798_v14 = vld [vmem:[%s2209_s1 + $0x28] sm:$0xff] (!%p138_p2)   ;;  %vm1098_vm5 = vsmask.f32 (!%p138_p2), 5376 }
   0x9   : > { %1619 = vmatprep.subr.bf16.mxu1 (!%p138_p2), %v1790_v3  ;;  %v1799_v20 = vld [vmem:[%s2209_s1 + $0x70] sm:$0xff] (!%p138_p2)   ;;  %v1801_v26 = vld [vmem:[%s2209_s1 + $0x78] sm:$0xff] (!%p138_p2)   ;;  %v1806_v30 = vld [vmem:[%s2209_s1 + $0x80] sm:$0xff] (!%p138_p2)  }
   0xa   : > { %v1800_v22 = vld [vmem:[%s2209_s1 + $0x30] sm:$0xff] (!%p138_p2)   ;;  %v1802_v27 = vld [vmem:[%s2209_s1 + $0x38] sm:$0xff] (!%p138_p2)   ;;  %v1807_v31 = vld [vmem:[%s2209_s1 + $0xc0] sm:$0xff] (!%p138_p2)  }
   0xb   : > { %1600 = vmatpush3.bf16.msra.mxu0 (!%p138_p2), %v1789_v2  ;;  %v1808_v34 = vld [vmem:[%s2209_s1 + $0x88] sm:$0xff] (!%p138_p2)   ;;  %v1810_v41 = vld [vmem:[%s2209_s1 + $0x90] sm:$0xff] (!%p138_p2)   ;;  %v1812_v49 = vld [vmem:[%s2209_s1 + $0x98] sm:$0xff] (!%p138_p2)  }
   0xc   : > { %1620 = vmatpush3.bf16.msra.mxu1 (!%p138_p2), %v1790_v3  ;;  %1601 = vmatprep.subr.bf16.mxu0 (!%p138_p2), %v1791_v4  ;;  %v1809_v35 = vld [vmem:[%s2209_s1 + $0xc8] sm:$0xff] (!%p138_p2)   ;;  %v1811_v44 = vld [vmem:[%s2209_s1 + $0xd0] sm:$0xff] (!%p138_p2)   ;;  %v1813_v51 = vld [vmem:[%s2209_s1 + $0xd8] sm:$0xff] (!%p138_p2)  }
   0xd   : > { %s2213_s13 = smov (!%p161_p3, %s1412_s13), 1  ;;  %1621 = vmatprep.subr.bf16.mxu1 %v1792_v5  ;;  %v1814_v52 = vld [vmem:[%s2209_s1 + $0xa0] sm:$0xff]   ;;  %v1816_v54 = vld [vmem:[%s2209_s1 + $0xa8] sm:$0xff]   ;;  %v1818_v56 = vld [vmem:[%s2209_s1 + $0xb0] sm:$0xff]  }
   0xe   : > { %s1777_s30 = smul.u32 20, %s2213_s13  ;;  %v1815_v53 = vld [vmem:[%s2209_s1 + $0xe0] sm:$0xff]   ;;  %v1817_v55 = vld [vmem:[%s2209_s1 + $0xe8] sm:$0xff]   ;;  %v1819_v61 = vld [vmem:[%s2209_s1 + $0xf0] sm:$0xff]  }
   0xf   : > { %1602 = vmatpush3.bf16.msra.mxu0 %v1791_v4  ;;  %v1820_v0 = vld [vmem:[%s2209_s1 + $0xb8] sm:$0xff]   ;;  %s1778_s15 = smul.u32 24, %s2213_s13 }
  0x10   : > { %1622 = vmatpush3.bf16.msra.mxu1 %v1792_v5  ;;  %1603 = vmatprep.subr.bf16.mxu0 %v1793_v6  ;;  %s1944_s10 = scalar_lea.vmem %s2208_s0, %s1777_s30  ;;  %v1821_v1 = vld [vmem:[%s2209_s1 + $0xf8] sm:$0xff]  }
  0x11   : > { %1623 = vmatprep.subr.bf16.mxu1 %v1794_v7  ;;  %v172_v11 = vld [vmem:[%s1944_s10] sm:$0xf]  ;;  %v1951_v12 = vld [vmem:[%s1944_s10 + $0x4] sm:$0xf]  ;;  %v1954_v13 = vld [vmem:[%s1944_s10 + $0x8] sm:$0xf]  ;;  %s170_s19 = scalar_lea.vmem %s2211_s3, %s1778_s15 }
  0x12   : > { %v191_v15 = vld [vmem:[%s1944_s10 + $0xc] sm:$0x1]  ;;  %v1419_v16 = vcombine.low %v172_v11, %v1951_v12  ;;  %v1429_v33 = vcombine.low %v1954_v13, %v1954_v13  ;;  %v431_v36 = vld [vmem:[%s1944_s10] sm:$0xe] }
  0x13   : > { %1604 = vmatpush3.bf16.msra.mxu0 %v1793_v6  ;;  %v1962_v17 = vcombine.low %v1954_v13, %v191_v15  ;;  %v1438_v37 = vcombine.low %v431_v36, %v1951_v12  ;;  %v556_v39 = vld [vmem:[%s1944_s10] sm:$0x8]  ;;  %v557_v40 = vld [vmem:[%s1944_s10 + $0xc] sm:$0x7]  ;;  %v1466_v15 = vcombine.low %v1951_v12, %v1954_v13 }
  0x14   : > { %1624 = vmatpush3.bf16.msra.mxu1 %v1794_v7  ;;  %1605 = vmatprep.subr.bf16.mxu0 %v1795_v8  ;;  %v220_v18 = vshrl.u32 %v1419_v16, 16  ;;  %v222_v19 = vshll.u32 %v1419_v16, 16  ;;  %v1447_v42 = vcombine.low %v556_v39, %v1951_v12  ;;  %v1448_v43 = vcombine.low %v1954_v13, %v557_v40  ;;  %v2035_v57 = vld [vmem:[%s1944_s10 + $0xc] sm:$0xf]  ;;  %v1823_v6 = vld [vmem:[%s2209_s1 + $0x100] sm:$0xff]   ;;  %v1831_v12 = vld [vmem:[%s2209_s1 + $0x118] sm:$0xff]  }
  0x15   : > { %1625 = vmatprep.subr.bf16.mxu1 %v1796_v9  ;;  %1633 = vmatprep.mubr.bf16.mxu1 %v1419_v16  ;;  %v227_v21 = vshll.u32 %v1962_v17, 16  ;;  %v231_v29 = vshrl.u32 %v1962_v17, 16  ;;  %v453_v38 = vrot.slane %v1962_v17, 1  ;;  %v452_v45 = vrot.slane %v1438_v37, 1  ;;  %v1826_v7 = vld [vmem:[%s2209_s1 + $0x140] sm:$0xff]   ;;  %v1828_v11 = vld [vmem:[%s2209_s1 + $0x148] sm:$0xff]  }
  0x16   : > { %v224_v23 = vrot.slane %v222_v19, 1  ;;  %v581_v46 = vrot.slane %v1447_v42, 3  ;;  %v2006_v47 = vrot.slane %v1448_v43, 3  ;;  %v707_v58 = vshrl.u32 %v1447_v42, 16  ;;  %v1829_v16 = vld [vmem:[%s2209_s1 + $0x110] sm:$0xff]   ;;  %v1839_v40 = vld [vmem:[%s2209_s1 + $0x138] sm:$0xff]  }
  0x17   : > { %1606 = vmatpush3.bf16.msra.mxu0 %v1795_v8  ;;  %v229_v24 = vrot.slane %v227_v21, 1  ;;  %v454_v48 = vsel %vm451_vm1, %v452_v45, %v453_v38  ;;  %v710_v59 = vshll.u32 %v1447_v42, 16  ;;  %v1457_v60 = vcombine.low %v1954_v13, %v2035_v57  ;;  %v1830_v17 = vld [vmem:[%s2209_s1 + $0x150] sm:$0xff]   ;;  %v1832_v13 = vld [vmem:[%s2209_s1 + $0x158] sm:$0xff]   ;;  %v1834_v21 = vld [vmem:[%s2209_s1 + $0x160] sm:$0xff]  }
  0x18   : > { %1626 = vmatpush3.bf16.msra.mxu1 %v1796_v9  ;;  %1607 = vmatprep.subr.bf16.mxu0 %v1797_v10  ;;  %v225_v25 = vor.u32 %v224_v23, %v220_v18  ;;  %v583_v50 = vsel %vm580_vm2, %v581_v46, %v2006_v47  ;;  %v709_v2 = vrot.slane %v707_v58, 3  ;;  %v945_v18 = vld [vmem:[%s1944_s10 + $0xc] sm:$0xf]  ;;  %v1078_v19 = vld [vmem:[%s1944_s10 + $0x10] sm:$0x7] }
  0x19   : > { %1627 = vmatprep.subr.bf16.mxu1 %v1798_v14  ;;  %v233_v32 = vor.u32 %v231_v29, %v229_v24  ;;  %v715_v62 = vshrl.u32 %v1457_v60, 16  ;;  %v718_v63 = vshll.u32 %v1457_v60, 16  ;;  %v712_v3 = vrot.slane %v710_v59, 4  ;;  %v944_v23 = vld [vmem:[%s1944_s10 + $0x8] sm:$0xf]  ;;  %v1848_v58 = vld [vmem:[%s2209_s1 + $0x190] sm:$0xff]  }
  0x1a   : > { %v230_v28 = vsel %vm218_vm0, %v225_v25, %v229_v24  ;;  %v1217_v24 = vld [vmem:[%s1944_s10 + $0x4] sm:$0x8]  ;;  %v1836_v29 = vld [vmem:[%s2209_s1 + $0x168] sm:$0xff]   ;;  %v1849_v59 = vld [vmem:[%s2209_s1 + $0x1d0] sm:$0xff]  }
  0x1b   : > { %1608 = vmatpush3.bf16.msra.mxu0 %v1797_v10  ;;  %1613 = vmatprep.mubr.bf16.mxu0 %v230_v28  ;;  %v717_v4 = vrot.slane %v715_v62, 3  ;;  %v720_v5 = vrot.slane %v718_v63, 4  ;;  %v713_v8 = vor.u32 %v712_v3, %v709_v2  ;;  %v1827_v10 = vld [vmem:[%s2209_s1 + $0x108] sm:$0xff]   ;;  %v1495_v25 = vcombine.low %v1217_v24, %v944_v23  ;;  %v943_v28 = vld [vmem:[%s1944_s10 + $0x4] sm:$0xc]  ;;  %v1850_v60 = vld [vmem:[%s2209_s1 + $0x198] sm:$0xff]  }
  0x1c   : > { %1628 = vmatpush3.bf16.msra.mxu1 %v1798_v14  ;;  %1609 = vmatprep.subr.bf16.mxu0 %v1799_v20  ;;  %v1852_v62 = vld [vmem:[%s2209_s1 + $0x1a0] sm:$0xff]   ;;  %v1856_v2 = vld [vmem:[%s2209_s1 + $0x1b0] sm:$0xff]  }
  0x1d   : > { %1629 = vmatprep.subr.bf16.mxu1 %v1800_v22  ;;  %v2054_v9 = vor.u32 %v720_v5, %v717_v4  ;;  %v1853_v63 = vld [vmem:[%s2209_s1 + $0x1e0] sm:$0xff]   ;;  %v1857_v3 = vld [vmem:[%s2209_s1 + $0x1f0] sm:$0xff]   ;;  %v1858_v4 = vld [vmem:[%s2209_s1 + $0x1b8] sm:$0xff]  }
  0x1e   : > { %v1859_v5 = vld [vmem:[%s2209_s1 + $0x1f8] sm:$0xff]  }
  0x1f   : > { %1610 = vmatpush3.bf16.msra.mxu0 %v1799_v20  ;;  %v722_v14 = vsel %vm705_vm3, %v713_v8, %v2054_v9  ;;  %v1833_v20 = vld [vmem:[%s2209_s1 + $0x120] sm:$0xff]   ;;  %v1865_v8 = vld [vmem:[%s2209_s1 + $0x210] sm:$0xff]  }
  0x20   : > { %1630 = vmatpush3.bf16.msra.mxu1 %v1800_v22  ;;  %1611 = vmatprep.subr.bf16.mxu0 %v1801_v26  ;;  %v2088_v22 = vcombine.low %v945_v18, %v1078_v19 }
  0x21   : > { %1631 = vmatprep.subr.bf16.mxu1 %v1802_v27 }
  0x22   : > { %v1111_v39 = vshll.u32 %v2088_v22, 16 }
  0x23   : > { %1612 = vmatpush3.bf16.msra.mxu0 %v1801_v26  ;;  %v1238_v26 = vrot.slane %v2088_v22, 3 }
  0x24   : > { %1632 = vmatpush3.bf16.msra.mxu1 %v1802_v27  ;;  %1637 = vmatprep.subr.bf16.mxu0 %v1806_v30  ;;  %v1835_v27 = vld [vmem:[%s2209_s1 + $0x128] sm:$0xff]   ;;  %v1113_v46 = vrot.slane %v1111_v39, 3 }
  0x25   : > { %1657 = vmatprep.subr.bf16.mxu1 %v1807_v31 }
  0x26   : > { %1614 = vmatmul.mubr.bf16.vlgmr.msra.gmra.mrb[0].mxu0 %v233_v32 }
  0x27   : > { %1634 = vmatmul.mubr.bf16.vlgmr.msra.gmra.mrb[0].mxu1 %v1429_v33  ;;  %1638 = vmatpush3.bf16.msra.mxu0 %v1806_v30  ;;  %v1237_v30 = vrot.slane %v1495_v25, 3  ;;  %v1837_v33 = vld [vmem:[%s2209_s1 + $0x130] sm:$0xff]  }
  0x28   : > { %1658 = vmatpush3.bf16.msra.mxu1 %v1807_v31  ;;  %1639 = vmatprep.subr.bf16.mxu0 %v1808_v34  ;;  %v1476_v31 = vcombine.low %v943_v28, %v944_v23 }
  0x29   : > { %1659 = vmatprep.subr.bf16.mxu1 %v1809_v35  ;;  %1653 = vmatprep.mubr.bf16.mxu0 %v454_v48  ;;  %v2103_v32 = vsel %vm580_vm2, %v1237_v30, %v1238_v26  ;;  %v1845_v48 = vld [vmem:[%s2209_s1 + $0x1c0] sm:$0xff]  }
  0x2a   : > { %1673 = vmatprep.mubr.bf16.mxu1 %v583_v50  ;;  %v1100_v36 = vshrl.u32 %v1476_v31, 16  ;;  %v1103_v37 = vshll.u32 %v1476_v31, 16 }
  0x2b   : > { %1640 = vmatpush3.bf16.msra.mxu0 %v1808_v34  ;;  %v1838_v34 = vld [vmem:[%s2209_s1 + $0x170] sm:$0xff]  }
  0x2c   : > { %1660 = vmatpush3.bf16.msra.mxu1 %v1809_v35  ;;  %1641 = vmatprep.subr.bf16.mxu0 %v1810_v41  ;;  %v946_v35 = vld [vmem:[%s1944_s10 + $0x10] sm:$0x3]  ;;  %v1102_v43 = vrot.slane %v1100_v36, 2 }
  0x2d   : > { %1661 = vmatprep.subr.bf16.mxu1 %v1811_v44  ;;  %v1477_v42 = vcombine.low %v945_v18, %v946_v35 }
  0x2f   : > { %1642 = vmatpush3.bf16.msra.mxu0 %v1810_v41  ;;  %v1840_v41 = vld [vmem:[%s2209_s1 + $0x178] sm:$0xff]   ;;  %v975_v50 = vrot.slane %v1477_v42, 2 }
  0x30   : > { %1662 = vmatpush3.bf16.msra.mxu1 %v1811_v44  ;;  %1643 = vmatprep.subr.bf16.mxu0 %v1812_v49  ;;  %v1105_v44 = vrot.slane %v1103_v37, 3 }
  0x31   : > { %1663 = vmatprep.subr.bf16.mxu1 %v1813_v51 }
  0x33   : > { %1644 = vmatpush3.bf16.msra.mxu0 %v1812_v49  ;;  %v974_v49 = vrot.slane %v1476_v31, 2 }
  0x34   : > { %1664 = vmatpush3.bf16.msra.mxu1 %v1813_v51  ;;  %1645 = vmatprep.subr.bf16.mxu0 %v1814_v52  ;;  %v1467_v51 = vcombine.low %v2035_v57, %v2035_v57 }
  0x35   : > { %1665 = vmatprep.subr.bf16.mxu1 %v1815_v53 }
  0x37   : > { %1646 = vmatpush3.bf16.msra.mxu0 %v1814_v52  ;;  %v1106_v52 = vor.u32 %v1105_v44, %v1102_v43 }
  0x38   : > { %1666 = vmatpush3.bf16.msra.mxu1 %v1815_v53  ;;  %1647 = vmatprep.subr.bf16.mxu0 %v1816_v54 }
  0x39   : > { %1667 = vmatprep.subr.bf16.mxu1 %v1817_v55 }
  0x3b   : > { %1648 = vmatpush3.bf16.msra.mxu0 %v1816_v54  ;;  %v1846_v54 = vld [vmem:[%s2209_s1 + $0x188] sm:$0xff]  }
  0x3c   : > { %1668 = vmatpush3.bf16.msra.mxu1 %v1817_v55  ;;  %1649 = vmatprep.subr.bf16.mxu0 %v1818_v56  ;;  %v1847_v55 = vld [vmem:[%s2209_s1 + $0x1c8] sm:$0xff]  }
  0x3d   : > { %1669 = vmatprep.subr.bf16.mxu1 %v1819_v61 }
  0x3f   : > { %1650 = vmatpush3.bf16.msra.mxu0 %v1818_v56  ;;  %v976_v56 = vsel %vm973_vm4, %v974_v49, %v975_v50 }
  0x40   : > { %1670 = vmatpush3.bf16.msra.mxu1 %v1819_v61  ;;  %1651 = vmatprep.subr.bf16.mxu0 %v1820_v0  ;;  %v1851_v61 = vld [vmem:[%s2209_s1 + $0x1d8] sm:$0xff]  }
  0x41   : > { %1671 = vmatprep.subr.bf16.mxu1 %v1821_v1 }
  0x43   : > { %1652 = vmatpush3.bf16.msra.mxu0 %v1820_v0  ;;  %v1854_v0 = vld [vmem:[%s2209_s1 + $0x1a8] sm:$0xff]  }
  0x44   : > { %1672 = vmatpush3.bf16.msra.mxu1 %v1821_v1  ;;  %1677 = vmatprep.subr.bf16.mxu0 %v1823_v6  ;;  %v1855_v1 = vld [vmem:[%s2209_s1 + $0x1e8] sm:$0xff]  }
  0x45   : > { %1697 = vmatprep.subr.bf16.mxu1 %v1826_v7 }
  0x46   : > { %1654 = vmatmul.mubr.bf16.vlgmr.msra.gmra.mrb[4].mxu0 %v453_v38  ;;  %v1108_v38 = vshrl.u32 %v2088_v22, 16 }
  0x47   : > { %1678 = vmatpush3.bf16.msra.mxu0 %v1823_v6  ;;  %1674 = vmatmul.mubr.bf16.vlgmr.msra.gmra.mrb[4].mxu1 %v2006_v47  ;;  %v1842_v47 = vld [vmem:[%s2209_s1 + $0x180] sm:$0xff]  }
  0x48   : > { %1698 = vmatpush3.bf16.msra.mxu1 %v1826_v7  ;;  %1679 = vmatprep.subr.bf16.mxu0 %v1827_v10  ;;  %v1110_v45 = vrot.slane %v1108_v38, 2  ;;  %v1863_v6 = vld [vmem:[%s2209_s1 + $0x200] sm:$0xff]   ;;  %v1864_v7 = vld [vmem:[%s2209_s1 + $0x208] sm:$0xff]  }
  0x49   : > { %1699 = vmatprep.subr.bf16.mxu1 %v1828_v11  ;;  %1693 = vmatprep.mubr.bf16.mxu0 %v722_v14  ;;  %v1869_v14 = vld [vmem:[%s2209_s1 + $0x230] sm:$0xff]  }
  0x4a   : > { %1713 = vmatprep.mubr.bf16.mxu1 %v1466_v15  ;;  %v1114_v53 = vor.u32 %v1113_v46, %v1110_v45  ;;  %v1870_v15 = vld [vmem:[%s2209_s1 + $0x238] sm:$0xff]  }
  0x4b   : > { %1680 = vmatpush3.bf16.msra.mxu0 %v1827_v10  ;;  %v1867_v10 = vld [vmem:[%s2209_s1 + $0x220] sm:$0xff]  }
  0x4c   : > { %1700 = vmatpush3.bf16.msra.mxu1 %v1828_v11  ;;  %1681 = vmatprep.subr.bf16.mxu0 %v1829_v16  ;;  %v1115_v57 = vsel %vm1098_vm5, %v1106_v52, %v1114_v53  ;;  %v1868_v11 = vld [vmem:[%s2209_s1 + $0x228] sm:$0xff]  }
  0x4d   : > { %1701 = vmatprep.subr.bf16.mxu1 %v1830_v17 }
  0x4f   : > { %1682 = vmatpush3.bf16.msra.mxu0 %v1829_v16 }
  0x50   : > { %1702 = vmatpush3.bf16.msra.mxu1 %v1830_v17  ;;  %1683 = vmatprep.subr.bf16.mxu0 %v1831_v12 }
  0x51   : > { %1703 = vmatprep.subr.bf16.mxu1 %v1832_v13 }
  0x53   : > { %1684 = vmatpush3.bf16.msra.mxu0 %v1831_v12 }
  0x54   : > { %1704 = vmatpush3.bf16.msra.mxu1 %v1832_v13  ;;  %1685 = vmatprep.subr.bf16.mxu0 %v1833_v20 }
  0x55   : > { %1705 = vmatprep.subr.bf16.mxu1 %v1834_v21 }
  0x57   : > { %1686 = vmatpush3.bf16.msra.mxu0 %v1833_v20 }
  0x58   : > { %1706 = vmatpush3.bf16.msra.mxu1 %v1834_v21  ;;  %1687 = vmatprep.subr.bf16.mxu0 %v1835_v27 }
  0x59   : > { %1707 = vmatprep.subr.bf16.mxu1 %v1836_v29 }
  0x5b   : > { %1688 = vmatpush3.bf16.msra.mxu0 %v1835_v27 }
  0x5c   : > { %1708 = vmatpush3.bf16.msra.mxu1 %v1836_v29  ;;  %1689 = vmatprep.subr.bf16.mxu0 %v1837_v33 }
  0x5d   : > { %1709 = vmatprep.subr.bf16.mxu1 %v1838_v34 }
  0x5f   : > { %1690 = vmatpush3.bf16.msra.mxu0 %v1837_v33 }
  0x60   : > { %1710 = vmatpush3.bf16.msra.mxu1 %v1838_v34  ;;  %1691 = vmatprep.subr.bf16.mxu0 %v1839_v40 }
  0x61   : > { %1711 = vmatprep.subr.bf16.mxu1 %v1840_v41 }
  0x63   : > { %1692 = vmatpush3.bf16.msra.mxu0 %v1839_v40 }
  0x64   : > { %1712 = vmatpush3.bf16.msra.mxu1 %v1840_v41  ;;  %1717 = vmatprep.subr.bf16.mxu0 %v1842_v47 }
  0x65   : > { %1737 = vmatprep.subr.bf16.mxu1 %v1845_v48 }
  0x66   : > { %1694 = vmatmul.mubr.bf16.vlgmr.msra.gmra.mrb[8].mxu0 %v2054_v9  ;;  %v1866_v9 = vld [vmem:[%s2209_s1 + $0x218] sm:$0xff]  }
  0x67   : > { %1718 = vmatpush3.bf16.msra.mxu0 %v1842_v47  ;;  %1714 = vmatmul.mubr.bf16.vlgmr.msra.gmra.mrb[8].mxu1 %v1467_v51 }
  0x68   : > { %1738 = vmatpush3.bf16.msra.mxu1 %v1845_v48  ;;  %1719 = vmatprep.subr.bf16.mxu0 %v1846_v54 }
  0x69   : > { %1739 = vmatprep.subr.bf16.mxu1 %v1847_v55  ;;  %1733 = vmatprep.mubr.bf16.mxu0 %v976_v56 }
  0x6a   : > { %1753 = vmatprep.mubr.bf16.mxu1 %v1115_v57 }
  0x6b   : > { %1720 = vmatpush3.bf16.msra.mxu0 %v1846_v54 }
  0x6c   : > { %1740 = vmatpush3.bf16.msra.mxu1 %v1847_v55  ;;  %1721 = vmatprep.subr.bf16.mxu0 %v1848_v58 }
  0x6d   : > { %1741 = vmatprep.subr.bf16.mxu1 %v1849_v59 }
  0x6f   : > { %1722 = vmatpush3.bf16.msra.mxu0 %v1848_v58 }
  0x70   : > { %1742 = vmatpush3.bf16.msra.mxu1 %v1849_v59  ;;  %1723 = vmatprep.subr.bf16.mxu0 %v1850_v60 }
  0x71   : > { %1743 = vmatprep.subr.bf16.mxu1 %v1851_v61 }
  0x73   : > { %1724 = vmatpush3.bf16.msra.mxu0 %v1850_v60 }
  0x74   : > { %1744 = vmatpush3.bf16.msra.mxu1 %v1851_v61  ;;  %1725 = vmatprep.subr.bf16.mxu0 %v1852_v62 }
  0x75   : > { %1745 = vmatprep.subr.bf16.mxu1 %v1853_v63 }
  0x77   : > { %1726 = vmatpush3.bf16.msra.mxu0 %v1852_v62 }
  0x78   : > { %1746 = vmatpush3.bf16.msra.mxu1 %v1853_v63  ;;  %1727 = vmatprep.subr.bf16.mxu0 %v1854_v0 }
  0x79   : > { %1747 = vmatprep.subr.bf16.mxu1 %v1855_v1 }
  0x7b   : > { %1728 = vmatpush3.bf16.msra.mxu0 %v1854_v0 }
  0x7c   : > { %1748 = vmatpush3.bf16.msra.mxu1 %v1855_v1  ;;  %1729 = vmatprep.subr.bf16.mxu0 %v1856_v2 }
  0x7d   : > { %1749 = vmatprep.subr.bf16.mxu1 %v1857_v3 }
  0x7f   : > { %1730 = vmatpush3.bf16.msra.mxu0 %v1856_v2 }
  0x80   : > { %1750 = vmatpush3.bf16.msra.mxu1 %v1857_v3  ;;  %1731 = vmatprep.subr.bf16.mxu0 %v1858_v4 }
  0x81   : > { %1751 = vmatprep.subr.bf16.mxu1 %v1859_v5 }
  0x83   : > { %1732 = vmatpush3.bf16.msra.mxu0 %v1858_v4  ;;  %v1504_v4 = vld [vmem:[%s2210_s2] ss:$0 sm:$0xff] }
  0x84   : > { %1752 = vmatpush3.bf16.msra.mxu1 %v1859_v5  ;;  %1757 = vmatprep.subr.bf16.mxu0 %v1863_v6 }
  0x86   : > { %1734 = vmatmul.mubr.bf16.vlgmr.msra.gmra.mrb[12].mxu0 %v975_v50 }
  0x87   : > { %1758 = vmatpush3.bf16.msra.mxu0 %v1863_v6  ;;  %1754 = vmatmul.mubr.bf16.vlgmr.msra.gmra.mrb[12].mxu1 %v1114_v53 }
  0x88   : > { %1759 = vmatprep.subr.bf16.mxu0 %v1864_v7  ;;  %1773 = vmatprep.mubr.bf16.mxu0 %v2103_v32 }
  0x8b   : > { %1760 = vmatpush3.bf16.msra.mxu0 %v1864_v7 }
  0x8c   : > { %1761 = vmatprep.subr.bf16.mxu0 %v1865_v8 }
  0x8f   : > { %1762 = vmatpush3.bf16.msra.mxu0 %v1865_v8 }
  0x90   : > { %1763 = vmatprep.subr.bf16.mxu0 %v1866_v9 }
  0x93   : > { %1764 = vmatpush3.bf16.msra.mxu0 %v1866_v9 }
  0x94   : > { %1765 = vmatprep.subr.bf16.mxu0 %v1867_v10 }
  0x97   : > { %1766 = vmatpush3.bf16.msra.mxu0 %v1867_v10 }
  0x98   : > { %1767 = vmatprep.subr.bf16.mxu0 %v1868_v11 }
  0x9b   : > { %1768 = vmatpush3.bf16.msra.mxu0 %v1868_v11 }
  0x9c   : > { %1769 = vmatprep.subr.bf16.mxu0 %v1869_v14 }
  0x9f   : > { %1770 = vmatpush3.bf16.msra.mxu0 %v1869_v14 }
  0xa0   : > { %1771 = vmatprep.subr.bf16.mxu0 %v1870_v15 }
  0xa3   : > { %1772 = vmatpush3.bf16.msra.mxu0 %v1870_v15 }
  0xa6   : > { %1774 = vmatmul.mubr.bf16.vlgmr.msra.gmra.mrb[16].mxu0 %v1238_v26 }
  0xf9   : > { %v1615_v16 = vpop.f32.mrb[0].mxu0 }
  0xfa   : > { %v1635_v17 = vpop.f32.mrb[0].mxu1  ;;  %v318_v12 = vpop.f32.mrb[1].mxu0 }
  0xfb   : > { %v426_v13 = vadd.f32 %v1635_v17, %v1615_v16  ;;  %v417_v18 = vpop.f32.mrb[1].mxu1  ;;  %v1616_v19 = vpop.f32.mrb[2].mxu0 }
  0xfc   : > { %v418_v20 = vadd.f32 %v417_v18, %v318_v12  ;;  %v1636_v21 = vpop.f32.mrb[2].mxu1  ;;  %v321_v23 = vpop.f32.mrb[3].mxu0 }
  0xfd   : > { %v420_v24 = vpop.f32.mrb[3].mxu1 }
  0xfe   : > { %v421_v25 = vadd.f32 %v420_v24, %v321_v23 }
 0x119   : > { %v1655_v27 = vpop.f32.mrb[4].mxu0 }
 0x11a   : > { %v555_v28 = vadd.f32 %v1655_v27, %v426_v13  ;;  %v539_v29 = vpop.f32.mrb[5].mxu0  ;;  %v1675_v30 = vpop.f32.mrb[4].mxu1 }
 0x11b   : > { %v553_v31 = vadd.f32 %v539_v29, %v418_v20  ;;  %v1656_v32 = vpop.f32.mrb[6].mxu0  ;;  %v668_v33 = vpop.f32.mrb[5].mxu1 }
 0x11c   : > { %v684_v22 = vadd.f32 %v1675_v30, %v555_v28  ;;  %v542_v26 = vpop.f32.mrb[7].mxu0  ;;  %v1676_v34 = vpop.f32.mrb[6].mxu1 }
 0x11d   : > { %v554_v35 = vadd.f32 %v542_v26, %v421_v25  ;;  %v682_v36 = vadd.f32 %v668_v33, %v553_v31  ;;  %v671_v37 = vpop.f32.mrb[7].mxu1 }
 0x11f   : > { %v683_v38 = vadd.f32 %v671_v37, %v554_v35 }
 0x139   : > { %v1695_v39 = vpop.f32.mrb[8].mxu0 }
 0x13a   : > { %v823_v40 = vadd.f32 %v1695_v39, %v684_v22  ;;  %v807_v41 = vpop.f32.mrb[9].mxu0  ;;  %v1715_v42 = vpop.f32.mrb[8].mxu1 }
 0x13b   : > { %v821_v43 = vadd.f32 %v807_v41, %v682_v36  ;;  %v1696_v44 = vpop.f32.mrb[10].mxu0  ;;  %v926_v45 = vpop.f32.mrb[9].mxu1 }
 0x13c   : > { %v942_v46 = vadd.f32 %v1715_v42, %v823_v40  ;;  %v810_v47 = vpop.f32.mrb[11].mxu0  ;;  %v1716_v48 = vpop.f32.mrb[10].mxu1 }
 0x13d   : > { %v822_v49 = vadd.f32 %v810_v47, %v683_v38  ;;  %v940_v50 = vadd.f32 %v926_v45, %v821_v43  ;;  %v929_v51 = vpop.f32.mrb[11].mxu1 }
 0x13f   : > { %v941_v52 = vadd.f32 %v929_v51, %v822_v49 }
 0x159   : > { %v1735_v53 = vpop.f32.mrb[12].mxu0 }
 0x15a   : > { %v1077_v54 = vadd.f32 %v1735_v53, %v942_v46  ;;  %v1061_v55 = vpop.f32.mrb[13].mxu0  ;;  %v1755_v56 = vpop.f32.mrb[12].mxu1 }
 0x15b   : > { %v1075_v57 = vadd.f32 %v1061_v55, %v940_v50  ;;  %v1736_v58 = vpop.f32.mrb[14].mxu0  ;;  %v1200_v59 = vpop.f32.mrb[13].mxu1 }
 0x15c   : > { %v1216_v60 = vadd.f32 %v1755_v56, %v1077_v54  ;;  %v1064_v61 = vpop.f32.mrb[15].mxu0  ;;  %v1756_v62 = vpop.f32.mrb[14].mxu1 }
 0x15d   : > { %v1076_v63 = vadd.f32 %v1064_v61, %v941_v52  ;;  %v1214_v0 = vadd.f32 %v1200_v59, %v1075_v57  ;;  %v1203_v1 = vpop.f32.mrb[15].mxu1 }
 0x15f   : > { %v1215_v2 = vadd.f32 %v1203_v1, %v1076_v63 }
 0x179   : > { %v1775_v3 = vpop.f32.mrb[16].mxu0 }
 0x17a   : > { %v1340_v5 = vadd.f32 %v1775_v3, %v1216_v60  ;;  %v1324_v6 = vpop.f32.mrb[17].mxu0 }
 0x17b   : > { %v1338_v7 = vadd.f32 %v1324_v6, %v1214_v0  ;;  %v1776_v8 = vpop.f32.mrb[18].mxu0 }
 0x17c   : > { %v1350_v9 = vadd.f32 %v1504_v4, %v1340_v5  ;;  %v1327_v10 = vpop.f32.mrb[19].mxu0 }
 0x17d   : > { %v1348_v11 = vadd.f32 %v1504_v4, %v1338_v7  ;;  %v1339_v14 = vadd.f32 %v1327_v10, %v1215_v2 }
 0x17e   : > { %v1353_v15 = vmax.f32 %v1350_v9, 0.0 }
 0x17f   : > { %v1351_v16 = vmax.f32 %v1348_v11, 0.0  ;;  %v1349_v17 = vadd.f32 %v1504_v4, %v1339_v14 }
 0x180   : > { %1356 = vst [vmem:[%s170_s19 + $0x10] sm:$0xff] %v1353_v15 }
 0x181   : > { %1354 = vst [vmem:[%s170_s19] sm:$0xff] %v1351_v16  ;;  %v1352_v12 = vmax.f32 %v1349_v17, 0.0 }
 0x183   : > { %1355 = vst [vmem:[%s170_s19 + $0x8] sm:$0xff] %v1352_v12 }
 0x184 PF: > { %s13_s12 = sadd.s32 1, %s1878_s12  }
 0x185   : > { %p10_p4 = scmp.ge.s32.totalorder %s13_s12, 4  }
 0x187   :  { %12 = sbr.rel (!%p10_p4) target bundleno = 1 (0x1), region = 62 }

// kernel: base_ocnet_forward.11
= control target key start
LH: loop header
LB: loop body
LE: loop exit
PB: predicated region body
PF: predicated region fallthrough
CT: control target
= control target key end

     0   :  { %s306_s1 = inlined_call_operand.vmem [shape: bf16[128,128], index: 1, kind: input, shape index: {}]   ;;  %s307_s0 = inlined_call_operand.vmem [shape: bf16[32,128], index: 0, kind: input, shape index: {}]   ;;  %s308_s2 = inlined_call_operand.vmem [shape: f32[1,128], index: 2, kind: input, shape index: {}]   ;;  %s309_s3 = inlined_call_operand.vmem [shape: f32[32,128], index: 3, kind: output, shape index: {}]  }
   0x1   :  { %v231_v0 = vld [vmem:[%s306_s1] sm:$0xff]   ;;  %v232_v1 = vld [vmem:[%s306_s1 + $0x8] sm:$0xff]   ;;  %v233_v2 = vld [vmem:[%s306_s1 + $0x10] sm:$0xff]  }
   0x2   :  { %211 = vmatprep.subr.bf16.mxu0 %v231_v0  ;;  %v234_v3 = vld [vmem:[%s306_s1 + $0x18] sm:$0xff]   ;;  %v239_v4 = vld [vmem:[%s307_s0] sm:$0xff]   ;;  %v236_v6 = vld [vmem:[%s306_s1 + $0x28] sm:$0xff]  }
   0x3   :  { %212 = vmatpush3.bf16.msra.mxu0 %v231_v0  ;;  %227 = vmatprep.mubr.bf16.mxu0 %v239_v4  ;;  %v235_v5 = vld [vmem:[%s306_s1 + $0x20] sm:$0xff]   ;;  %v237_v7 = vld [vmem:[%s306_s1 + $0x30] sm:$0xff]   ;;  %v238_v8 = vld [vmem:[%s306_s1 + $0x38] sm:$0xff]  }
   0x4   :  { %213 = vmatprep.subr.bf16.mxu0 %v232_v1  ;;  %v240_v9 = vld [vmem:[%s307_s0 + $0x8] sm:$0xff]   ;;  %v200_v10 = vld [vmem:[%s308_s2] ss:$0 sm:$0xff] }
   0x7   :  { %214 = vmatpush3.bf16.msra.mxu0 %v232_v1 }
   0x8   :  { %215 = vmatprep.subr.bf16.mxu0 %v233_v2 }
   0xb   :  { %216 = vmatpush3.bf16.msra.mxu0 %v233_v2 }
   0xc   :  { %217 = vmatprep.subr.bf16.mxu0 %v234_v3 }
   0xf   :  { %218 = vmatpush3.bf16.msra.mxu0 %v234_v3 }
  0x10   :  { %219 = vmatprep.subr.bf16.mxu0 %v235_v5 }
  0x13   :  { %220 = vmatpush3.bf16.msra.mxu0 %v235_v5 }
  0x14   :  { %221 = vmatprep.subr.bf16.mxu0 %v236_v6 }
  0x17   :  { %222 = vmatpush3.bf16.msra.mxu0 %v236_v6 }
  0x18   :  { %223 = vmatprep.subr.bf16.mxu0 %v237_v7 }
  0x1b   :  { %224 = vmatpush3.bf16.msra.mxu0 %v237_v7 }
  0x1c   :  { %225 = vmatprep.subr.bf16.mxu0 %v238_v8 }
  0x1f   :  { %226 = vmatpush3.bf16.msra.mxu0 %v238_v8 }
  0x22   :  { %228 = vmatmul.mubr.bf16.vlgmr.msra.gmra.mrb[0].mxu0 %v240_v9 }
  0xf5   :  { %v229_v11 = vpop.f32.mrb[0].mxu0 }
  0xf6   :  { %v180_v12 = vadd.f32 %v229_v11, %v200_v10  ;;  %v141_v13 = vpop.f32.mrb[1].mxu0 }
  0xf7   :  { %v178_v14 = vadd.f32 %v200_v10, %v141_v13  ;;  %v230_v15 = vpop.f32.mrb[2].mxu0 }
  0xf8   :  { %184 = vst [vmem:[%s309_s3 + $0x10] sm:$0xff] %v180_v12  ;;  %v181_v16 = vadd.f32 %v230_v15, %v200_v10  ;;  %v144_v17 = vpop.f32.mrb[3].mxu0 }
  0xf9   :  { %182 = vst [vmem:[%s309_s3] sm:$0xff] %v178_v14  ;;  %v179_v18 = vadd.f32 %v200_v10, %v144_v17 }
  0xfa   :  { %185 = vst [vmem:[%s309_s3 + $0x18] sm:$0xff] %v181_v16 }
  0xfb   :  { %183 = vst [vmem:[%s309_s3 + $0x8] sm:$0xff] %v179_v18 }

// kernel: base_ocnet_forward.10
= control target key start
LH: loop header
LB: loop body
LE: loop exit
PB: predicated region body
PF: predicated region fallthrough
CT: control target
= control target key end

     0   :  { %s1072_s27 = smov 0   ;;  %s1204_s0 = inlined_call_operand.vmem [shape: bf16[2,16,128], index: 0, kind: input, shape index: {}]   ;;  %s1205_s1 = inlined_call_operand.vmem [shape: bf16[128,32], index: 1, kind: input, shape index: {}]   ;;  %s1206_s2 = inlined_call_operand.vmem [shape: f32[1,32], index: 2, kind: input, shape index: {}]   ;;  %s1207_s3 = inlined_call_operand.vmem [shape: bf16[16,32], index: 3, kind: input, shape index: {}]   ;;  %s1208_s4 = inlined_call_operand.vmem [shape: f32[1,32], index: 4, kind: input, shape index: {}]   ;;  %s1209_s5 = inlined_call_operand.vmem [shape: bf16[32,128], index: 5, kind: input, shape index: {}]   ;;  %s1210_s6 = inlined_call_operand.vmem [shape: bf16[128,128], index: 6, kind: input, shape index: {}]   ;;  %s1211_s7 = inlined_call_operand.vmem [shape: f32[1,128], index: 7, kind: input, shape index: {}]   ;;  %s1212_s8 = inlined_call_operand.vmem [shape: f32[2,16,128], index: 8, kind: output, shape index: {}]  }
   0x1 LB: > { %s844_s28 = sadd.s32 4294967295, %s1022_s27   ;;  %p848_p0 = scmp.ge.s32.totalorder %s1022_s27, 1  ;;  %s1022_s27 = sphi %s1072_s27, %s18_s27  }
   0x2   : > { %p262_p1 = scmp.lt.s32.totalorder %s1022_s27, 3 }
   0x4   : > { %p263_p2 = pnand %p848_p0, %p262_p1 }
   0x5   : > { %v988_v0 = vld [vmem:[%s1205_s1] sm:$0xff] (!%p263_p2)   ;;  %v1024_v1 = vmov (!%p263_p2), 0.0   ;;  %v989_v2 = vld [vmem:[%s1205_s1 + $0x8] sm:$0xff] (!%p263_p2)   ;;  %vm1025_vm0 = vmmov (!%p263_p2), 0   ;;  %p296_p3 = scmp.lt.s32.totalorder (!%p263_p2), %s844_s28, 1  ;;  %v990_v3 = vld [vmem:[%s1205_s1 + $0x10] sm:$0xff] (!%p263_p2)  }
   0x6   : > { %266 = sbr.rel (%p263_p2) target bundleno = 1455 (0x5af), region = 52  ;;  %911 = vmatprep.subr.bf16.mxu0 (!%p263_p2), %v1024_v1  ;;  %937 = vmatprep.subr.bf16.mxu1 (!%p263_p2), %v1024_v1  ;;  %v991_v4 = vld [vmem:[%s1205_s1 + $0x18] sm:$0xff] (!%p263_p2)   ;;  %v992_v5 = vld [vmem:[%s1205_s1 + $0x20] sm:$0xff] (!%p263_p2)   ;;  %v993_v6 = vld [vmem:[%s1205_s1 + $0x28] sm:$0xff] (!%p263_p2)   ;;  %vm430_vm1 = vcmask (!%p263_p2), 130048   ;;  %s1026_s9 = smov (!%p263_p2), 112  }
   0x7   : > { %912 = vmatpush3.bf16.msra.mxu0 (!%p263_p2), %v988_v0  ;;  %927 = vmatprep.mubr.msk.bf16.mxu0 (!%p263_p2), %vm1025_vm0, %v1024_v1  ;;  %v994_v7 = vld [vmem:[%s1205_s1 + $0x30] sm:$0xff] (!%p263_p2)   ;;  %v995_v8 = vld [vmem:[%s1205_s1 + $0x38] sm:$0xff] (!%p263_p2)   ;;  %v853_v10 = vld [vmem:[%s1206_s2] ss:$0 sm:$0xff] (!%p263_p2)  ;;  %vm731_vm2 = vcmask (!%p263_p2), 261120  }
   0x8   : > { %913 = vmatprep.subr.bf16.mxu0 (!%p263_p2), %v1024_v1  ;;  %939 = vmatprep.mubr.msk.bf16.mxu1 (!%p263_p2), %vm1025_vm0, %v1024_v1  ;;  %v997_v47 = vld [vmem:[%s1207_s3] sm:$0xff] (!%p263_p2)   ;;  %v999_v55 = vld [vmem:[%s1210_s6 + $0x8] sm:$0xff] (!%p263_p2)   ;;  %v1000_v56 = vld [vmem:[%s1210_s6 + $0x10] sm:$0xff] (!%p263_p2)  }
   0x9   : > { %v998_v52 = vld [vmem:[%s1210_s6] sm:$0xff] (!%p263_p2)   ;;  %v1001_v57 = vld [vmem:[%s1210_s6 + $0x18] sm:$0xff] (!%p263_p2)   ;;  %v1003_v59 = vld [vmem:[%s1210_s6 + $0x28] sm:$0xff] (!%p263_p2)  }
   0xa   : > { %v1002_v58 = vld [vmem:[%s1210_s6 + $0x20] sm:$0xff] (!%p263_p2)   ;;  %v1004_v60 = vld [vmem:[%s1210_s6 + $0x30] sm:$0xff] (!%p263_p2)   ;;  %v1006_v62 = vld [vmem:[%s1210_s6 + $0x38] sm:$0xff] (!%p263_p2)  }
   0xb   : > { %914 = vmatpush3.bf16.msra.mxu0 (!%p263_p2), %v989_v2  ;;  %v1005_v61 = vld [vmem:[%s1209_s5] sm:$0xff] (!%p263_p2)   ;;  %v1007_v63 = vld [vmem:[%s1209_s5 + $0x8] sm:$0xff] (!%p263_p2)  }
   0xc   : > { %915 = vmatprep.subr.bf16.mxu0 (!%p263_p2), %v1024_v1  ;;  %v865_v0 = vld [vmem:[%s1208_s4] ss:$0 sm:$0xff] (!%p263_p2) }
   0xd   : > { %s1214_s28 = smov (!%p296_p3, %s844_s28), 1 }
   0xe   : > { %s882_s13 = sshll.u32 %s1214_s28, 3 }
   0xf   : > { %s300_s16 = scalar_lea.vmem %s1204_s0, %s882_s13  ;;  %916 = vmatpush3.bf16.msra.mxu0 %v990_v3 }
  0x10   : > { %917 = vmatprep.subr.bf16.mxu0 %v1024_v1  ;;  %v1123_v9 = vld [vmem:[%s300_s16] sm:$0xff]   ;;  %s883_s16 = sshll.u32 %s1214_s28, 4 }
  0x11   : > { %s305_s19 = scalar_lea.vmem %s1212_s8, %s883_s16 }
  0x13   : > { %918 = vmatpush3.bf16.msra.mxu0 %v991_v4 }
  0x14   : > { %919 = vmatprep.subr.bf16.mxu0 %v1024_v1 }
  0x17   : > { %920 = vmatpush3.bf16.msra.mxu0 %v992_v5 }
  0x18   : > { %921 = vmatprep.subr.bf16.mxu0 %v1024_v1 }
  0x1b   : > { %922 = vmatpush3.bf16.msra.mxu0 %v993_v6 }
  0x1c   : > { %923 = vmatprep.subr.bf16.mxu0 %v1024_v1 }
  0x1f   : > { %924 = vmatpush3.bf16.msra.mxu0 %v994_v7 }
  0x20   : > { %925 = vmatprep.subr.bf16.mxu0 %v1024_v1 }
  0x23   : > { %926 = vmatpush3.bf16.msra.mxu0 %v995_v8 }
  0x24   : > { %931 = vmatprep.subr.bf16.mxu0 %v1024_v1 }
  0x26   : > { %928 = vmatmul.mubr.bf16.vlgmr.msra.gmra.mrb[0].mxu0 %v1123_v9 }
  0x27   : > { %933 = vmatprep.mubr.msk.bf16.mxu0 %vm1025_vm0, %v1024_v1 }
  0xf9   : > { %v420_v11 = vpop.f32.mrb[0].mxu0 }
  0xfa   : > { %v421_v12 = vadd.f32 %v853_v10, %v420_v11  ;;  %v929_v13 = vpop.f32.mrb[1].mxu0 }
  0xfb   : > { %v423_v14 = vpop.f32.mrb[2].mxu0 }
  0xfc   : > { %v424_v15 = vadd.f32 %v853_v10, %v423_v14  ;;  %v930_v16 = vpop.f32.mrb[3].mxu0  ;;  %v427_v17 = vmax.f32 %v421_v12, 0.0 }
  0xfe   : > { %v428_v18 = vmax.f32 %v424_v15, 0.0  ;;  %v500_v19 = vpack.c.bf16 %v424_v15, %v421_v12 }
 0x100   : > { %v429_v20 = vpack.c.bf16 %v428_v18, %v427_v17 }
 0x102   : > { %v432_v21 = vsel %vm430_vm1, %v429_v20, 0 }
 0x103   : > { %932 = vmatpush3.bf16.xpose.msra.mxu0 %v432_v21 }
 0x104   : > { %969 = vmatprep.subr.bf16.mxu0 %v1024_v1 }
 0x10a   : > { %934 = vmatmul.mubr.msk.bf16.vlgmr.msra.gmra.mrb[4].mxu0 %vm430_vm1, %v429_v20 }
 0x10b   : > { %973 = vmatprep.mubr.msk.bf16.mxu0 %vm1025_vm0, %v1024_v1  ;;  %970 = vmatpush3.bf16.msra.mxu0 %v1005_v61 }
 0x10c   : > { %971 = vmatprep.subr.bf16.mxu0 %v1024_v1 }
 0x10f   : > { %972 = vmatpush3.bf16.msra.mxu0 %v1007_v63 }
 0x1dd   : > { %v468_v22 = vpop.f32.mrb[4].mxu0 }
 0x1de   : > { %v475_v23 = vmul.f32 0.25, %v468_v22  ;;  %v935_v24 = vpop.f32.mrb[5].mxu0 }
 0x1df   : > { %v471_v25 = vpop.f32.mrb[6].mxu0 }
 0x1e0   : > { %v476_v26 = vmul.f32 0.25, %v471_v25  ;;  %v936_v27 = vpop.f32.mrb[7].mxu0  ;;  %v477_v28 = vsel %vm430_vm1, %v475_v23, -inf }
 0x1e1   : > { %478 = vmax.xlane.f32.xlu0 %v477_v28 }
 0x1e2   : > { %v480_v29 = vsel %vm430_vm1, %v476_v26, -inf }
 0x1e5   : > { %481 = vmax.xlane.f32.xlu0 %v480_v29 }
 0x1fb   : > { %502 = vrot.lane.b32.xlu0 %v500_v19, %s1026_s9 }
 0x26e   : > { %v479_v30 = vpop.xlane.xlu0 %478 }
 0x26f   : > { %v483_v31 = vsub.f32 %v475_v23, %v479_v30 }
 0x271   : > { %v485_v32 = vmul.f32 1.442695, %v483_v31 }
 0x272   : > { %v482_v33 = vpop.xlane.xlu0 %481 }
 0x273   : > { %1008 = vpow2.f32 %v485_v32  ;;  %v484_v34 = vsub.f32 %v476_v26, %v482_v33 }
 0x275   : > { %v487_v35 = vmul.f32 1.442695, %v484_v34 }
 0x276   : > { %v503_v36 = vpop.permute.xlu0 %502 }
 0x277   : > { %1010 = vpow2.f32 %v487_v35  ;;  %938 = vmatpush3.bf16.msra.mxu1 %v503_v36 }
 0x278   : > { %943 = vmatprep.subr.bf16.mxu1 %v1024_v1 }
 0x27d   : > { %v1009_v37 = vpop.eup %1008 }
 0x27e   : > { %v489_v38 = vsel %vm430_vm1, %v1009_v37, 0.0 }
 0x27f   : > { %490 = vadd.xlane.f32.xlu1 %v489_v38 }
 0x281   : > { %v1011_v39 = vpop.eup %1010 }
 0x282   : > { %v492_v40 = vsel %vm430_vm1, %v1011_v39, 0.0 }
 0x283   : > { %493 = vadd.xlane.f32.xlu1 %v492_v40 }
 0x30c   : > { %v491_v41 = vpop.xlane.xlu1 %490 }
 0x30d   : > { %1012 = vrcp.f32 %v491_v41 }
 0x310   : > { %v494_v42 = vpop.xlane.xlu1 %493 }
 0x311   : > { %1014 = vrcp.f32 %v494_v42 }
 0x317   : > { %v1013_v43 = vpop.eup %1012 }
 0x318   : > { %v497_v45 = vmul.f32 %v1013_v43, %v1009_v37 }
 0x31b   : > { %v1015_v44 = vpop.eup %1014 }
 0x31c   : > { %v498_v46 = vmul.f32 %v1015_v44, %v1011_v39 }
 0x31e   : > { %v499_v48 = vpack.c.bf16 %v498_v46, %v497_v45 }
 0x320   : > { %940 = vmatmul.mubr.msk.bf16.vlgmr.msra.gmra.mrb[0].mxu1 %vm430_vm1, %v499_v48 }
 0x321   : > { %944 = vmatpush3.bf16.msra.mxu1 %v997_v47  ;;  %945 = vmatprep.mubr.msk.bf16.mxu1 %vm1025_vm0, %v1024_v1 }
 0x322   : > { %949 = vmatprep.subr.bf16.mxu1 %v1024_v1 }
 0x3f3   : > { %v542_v49 = vpop.f32.mrb[0].mxu1 }
 0x3f4   : > { %v941_v50 = vpop.f32.mrb[1].mxu1 }
 0x3f5   : > { %v545_v51 = vpop.f32.mrb[2].mxu1 }
 0x3f6   : > { %v549_v53 = vpack.c.bf16 %v545_v51, %v542_v49  ;;  %v942_v54 = vpop.f32.mrb[3].mxu1 }
 0x3f8   : > { %946 = vmatmul.mubr.msk.bf16.vlgmr.msra.gmra.mrb[4].mxu1 %vm430_vm1, %v549_v53 }
 0x3f9   : > { %950 = vmatpush3.bf16.msra.mxu1 %v998_v52  ;;  %965 = vmatprep.mubr.msk.bf16.mxu1 %vm1025_vm0, %v1024_v1 }
 0x3fa   : > { %951 = vmatprep.subr.bf16.mxu1 %v1024_v1 }
 0x3fd   : > { %952 = vmatpush3.bf16.msra.mxu1 %v999_v55 }
 0x3fe   : > { %953 = vmatprep.subr.bf16.mxu1 %v1024_v1 }
 0x401   : > { %954 = vmatpush3.bf16.msra.mxu1 %v1000_v56 }
 0x402   : > { %955 = vmatprep.subr.bf16.mxu1 %v1024_v1 }
 0x405   : > { %956 = vmatpush3.bf16.msra.mxu1 %v1001_v57 }
 0x406   : > { %957 = vmatprep.subr.bf16.mxu1 %v1024_v1 }
 0x409   : > { %958 = vmatpush3.bf16.msra.mxu1 %v1002_v58 }
 0x40a   : > { %959 = vmatprep.subr.bf16.mxu1 %v1024_v1 }
 0x40d   : > { %960 = vmatpush3.bf16.msra.mxu1 %v1003_v59 }
 0x40e   : > { %961 = vmatprep.subr.bf16.mxu1 %v1024_v1 }
 0x411   : > { %962 = vmatpush3.bf16.msra.mxu1 %v1004_v60 }
 0x412   : > { %963 = vmatprep.subr.bf16.mxu1 %v1024_v1 }
 0x415   : > { %964 = vmatpush3.bf16.msra.mxu1 %v1006_v62 }
 0x418   : > { %966 = vmatmul.mubr.bf16.vlgmr.msra.gmra.mrb[8].mxu1 %v1123_v9  ;;  %v879_v9 = vld [vmem:[%s1211_s7] ss:$0 sm:$0xff] }
 0x4cb   : > { %v602_v2 = vpop.f32.mrb[4].mxu1 }
 0x4cc   : > { %v947_v3 = vpop.f32.mrb[5].mxu1  ;;  %v603_v5 = vadd.f32 %v865_v0, %v602_v2 }
 0x4cd   : > { %v605_v4 = vpop.f32.mrb[6].mxu1 }
 0x4ce   : > { %v606_v6 = vadd.f32 %v865_v0, %v605_v4  ;;  %v948_v7 = vpop.f32.mrb[7].mxu1 }
 0x4d0   : > { %v609_v1 = vpack.c.bf16 %v606_v6, %v603_v5 }
 0x4d2   : > { %974 = vmatmul.mubr.msk.bf16.vlgmr.msra.gmra.mrb[8].mxu0 %vm731_vm2, %v609_v1 }
 0x4eb   : > { %v712_v8 = vpop.f32.mrb[8].mxu1 }
 0x4ec   : > { %v967_v10 = vpop.f32.mrb[9].mxu1 }
 0x4ed   : > { %v715_v11 = vpop.f32.mrb[10].mxu1 }
 0x4ee   : > { %v968_v12 = vpop.f32.mrb[11].mxu1 }
 0x5a5   : > { %v769_v13 = vpop.f32.mrb[8].mxu0 }
 0x5a6   : > { %v770_v14 = vadd.f32 %v769_v13, %v712_v8  ;;  %v975_v15 = vpop.f32.mrb[9].mxu0 }
 0x5a7   : > { %v772_v16 = vpop.f32.mrb[10].mxu0 }
 0x5a8   : > { %v783_v17 = vadd.f32 %v879_v9, %v770_v14  ;;  %v773_v18 = vadd.f32 %v772_v16, %v715_v11  ;;  %v976_v19 = vpop.f32.mrb[11].mxu0 }
 0x5aa   : > { %v785_v20 = vmax.f32 %v783_v17, 0.0  ;;  %v784_v21 = vadd.f32 %v879_v9, %v773_v18 }
 0x5ac   : > { %787 = vst [vmem:[%s305_s19] sm:$0xff] %v785_v20  ;;  %v786_v22 = vmax.f32 %v784_v21, 0.0 }
 0x5ae   : > { %788 = vst [vmem:[%s305_s19 + $0x8] sm:$0xff] %v786_v22 }
 0x5af PF: > { %s18_s27 = sadd.s32 1, %s1022_s27  }
 0x5b0   : > { %p15_p4 = scmp.ge.s32.totalorder %s18_s27, 4  }
 0x5b2   :  { %17 = sbr.rel (!%p15_p4) target bundleno = 1 (0x1), region = 82 }

// kernel: base_ocnet_forward.7
= control target key start
LH: loop header
LB: loop body
LE: loop exit
PB: predicated region body
PF: predicated region fallthrough
CT: control target
= control target key end

     0   :  { %s1486_s12 = smov 0   ;;  %s1689_s0 = inlined_call_operand.vmem [shape: bf16[2,38,64], index: 0, kind: input, shape index: {}]   ;;  %s1690_s1 = inlined_call_operand.vmem [shape: bf16[576,128], index: 1, kind: input, shape index: {}]   ;;  %s1691_s2 = inlined_call_operand.vmem [shape: f32[1,128], index: 2, kind: input, shape index: {}]   ;;  %s1692_s3 = inlined_call_operand.vmem [shape: f32[2,24,128], index: 3, kind: output, shape index: {}]  }
   0x1 LB: > { %s1160_s13 = sadd.s32 4294967295, %s1464_s12   ;;  %p1164_p0 = scmp.ge.s32.totalorder %s1464_s12, 1  ;;  %s1464_s12 = sphi %s1486_s12, %s13_s12  }
   0x2   : > { %p137_p1 = scmp.lt.s32.totalorder %s1464_s12, 3 }
   0x4   : > { %p138_p2 = pnand %p1164_p0, %p137_p1 }
   0x5   : > { %v1409_v0 = vld [vmem:[%s1690_s1 + $0x20] sm:$0xff] (!%p138_p2)   ;;  %p161_p3 = scmp.lt.s32.totalorder (!%p138_p2), %s1160_s13, 1  ;;  %v1411_v2 = vld [vmem:[%s1690_s1 + $0x28] sm:$0xff] (!%p138_p2)   ;;  %v1413_v4 = vld [vmem:[%s1690_s1 + $0x30] sm:$0xff] (!%p138_p2)   ;;  %vm242_vm0 = vcmask (!%p138_p2), 523264   ;;  %vm387_vm2 = vcmask (!%p138_p2), 1046528  }
   0x6   : > { %141 = sbr.rel (%p138_p2) target bundleno = 314 (0x13a), region = 32  ;;  %v1410_v1 = vld [vmem:[%s1690_s1] sm:$0xff] (!%p138_p2)   ;;  %1291 = vmatprep.subr.bf16.mxu0 (!%p138_p2), %v1409_v0  ;;  %v1412_v3 = vld [vmem:[%s1690_s1 + $0x8] sm:$0xff] (!%p138_p2)   ;;  %v1414_v5 = vld [vmem:[%s1690_s1 + $0x10] sm:$0xff] (!%p138_p2)   ;;  %vm202_vm1 = vsmask.f32 (!%p138_p2), 7424 }
   0x7   : > { %1303 = vmatprep.subr.bf16.mxu1 (!%p138_p2), %v1410_v1  ;;  %1292 = vmatpush3.bf16.msra.mxu0 (!%p138_p2), %v1409_v0  ;;  %v1415_v6 = vld [vmem:[%s1690_s1 + $0x38] sm:$0xff] (!%p138_p2)   ;;  %v1420_v16 = vld [vmem:[%s1690_s1 + $0x40] sm:$0xff] (!%p138_p2)   ;;  %v1422_v25 = vld [vmem:[%s1690_s1 + $0x48] sm:$0xff] (!%p138_p2)   ;;  %vm488_vm3 = vcmask (!%p138_p2), 1044480   ;;  %vm585_vm4 = vsmask.f32 (!%p138_p2), 4352 }
   0x8   : > { %1304 = vmatpush3.bf16.msra.mxu1 (!%p138_p2), %v1410_v1  ;;  %1293 = vmatprep.subr.bf16.mxu0 (!%p138_p2), %v1411_v2  ;;  %v1416_v10 = vld [vmem:[%s1690_s1 + $0x18] sm:$0xff] (!%p138_p2)   ;;  %v1421_v20 = vld [vmem:[%s1690_s1 + $0x60] sm:$0xff] (!%p138_p2)   ;;  %v1423_v27 = vld [vmem:[%s1690_s1 + $0x68] sm:$0xff] (!%p138_p2)   ;;  %vm797_vm5 = vcmask (!%p138_p2), 1045504   ;;  %vm894_vm6 = vsmask.f32 (!%p138_p2), 5376 }
   0x9   : > { %1305 = vmatprep.subr.bf16.mxu1 (!%p138_p2), %v1412_v3  ;;  %v1424_v33 = vld [vmem:[%s1690_s1 + $0x50] sm:$0xff] (!%p138_p2)   ;;  %v1426_v42 = vld [vmem:[%s1690_s1 + $0x58] sm:$0xff] (!%p138_p2)   ;;  %v1429_v46 = vld [vmem:[%s1690_s1 + $0x80] sm:$0xff] (!%p138_p2)  }
   0xa   : > { %v1425_v36 = vld [vmem:[%s1690_s1 + $0x70] sm:$0xff] (!%p138_p2)   ;;  %v1427_v45 = vld [vmem:[%s1690_s1 + $0x78] sm:$0xff] (!%p138_p2)   ;;  %v1432_v51 = vld [vmem:[%s1690_s1 + $0xa0] sm:$0xff] (!%p138_p2)  }
   0xb   : > { %1294 = vmatpush3.bf16.msra.mxu0 (!%p138_p2), %v1411_v2  ;;  %v1433_v54 = vld [vmem:[%s1690_s1 + $0x88] sm:$0xff] (!%p138_p2)   ;;  %v1435_v61 = vld [vmem:[%s1690_s1 + $0x90] sm:$0xff] (!%p138_p2)  }
   0xc   : > { %1306 = vmatpush3.bf16.msra.mxu1 (!%p138_p2), %v1412_v3  ;;  %1295 = vmatprep.subr.bf16.mxu0 (!%p138_p2), %v1413_v4  ;;  %v1434_v55 = vld [vmem:[%s1690_s1 + $0xa8] sm:$0xff] (!%p138_p2)   ;;  %v1436_v63 = vld [vmem:[%s1690_s1 + $0xb0] sm:$0xff] (!%p138_p2)  }
   0xd   : > { %s1694_s13 = smov (!%p161_p3, %s1160_s13), 1  ;;  %1307 = vmatprep.subr.bf16.mxu1 %v1414_v5 }
   0xe   : > { %s1399_s24 = smul.u32 20, %s1694_s13 }
   0xf   : > { %1296 = vmatpush3.bf16.msra.mxu0 %v1413_v4  ;;  %s1400_s16 = smul.u32 24, %s1694_s13 }
  0x10   : > { %s1518_s29 = scalar_lea.vmem %s1689_s0, %s1399_s24  ;;  %1308 = vmatpush3.bf16.msra.mxu1 %v1414_v5  ;;  %1297 = vmatprep.subr.bf16.mxu0 %v1415_v6 }
  0x11   : > { %v172_v7 = vld [vmem:[%s1518_s29] sm:$0xf]  ;;  %v1525_v8 = vld [vmem:[%s1518_s29 + $0x4] sm:$0xf]  ;;  %v1528_v9 = vld [vmem:[%s1518_s29 + $0x8] sm:$0xf]  ;;  %1309 = vmatprep.subr.bf16.mxu1 %v1416_v10  ;;  %s170_s21 = scalar_lea.vmem %s1692_s3, %s1400_s16 }
  0x12   : > { %v183_v11 = vld [vmem:[%s1518_s29 + $0xc] sm:$0x1]  ;;  %v1167_v12 = vcombine.low %v172_v7, %v1525_v8  ;;  %v1175_v23 = vcombine.low %v1528_v9, %v1528_v9  ;;  %v375_v28 = vld [vmem:[%s1518_s29] sm:$0xe]  ;;  %v1204_v60 = vcombine.low %v1525_v8, %v1528_v9  ;;  %v775_v62 = vld [vmem:[%s1518_s29 + $0x4] sm:$0xc] }
  0x13   : > { %v1536_v13 = vcombine.low %v1528_v9, %v183_v11  ;;  %1298 = vmatpush3.bf16.msra.mxu0 %v1415_v6  ;;  %v1182_v29 = vcombine.low %v375_v28, %v1525_v8  ;;  %v472_v31 = vld [vmem:[%s1518_s29] sm:$0x8]  ;;  %v473_v32 = vld [vmem:[%s1518_s29 + $0xc] sm:$0x7]  ;;  %v1611_v1 = vld [vmem:[%s1518_s29 + $0x8] sm:$0xf] }
  0x14   : > { %v204_v14 = vshrl.u32 %v1167_v12, 16  ;;  %v206_v15 = vshll.u32 %v1167_v12, 16  ;;  %1311 = vmatprep.mubr.msk.bf16.mxu1 %vm242_vm0, %v1167_v12  ;;  %1310 = vmatpush3.bf16.msra.mxu1 %v1416_v10  ;;  %v1189_v34 = vcombine.low %v472_v31, %v1525_v8  ;;  %v1190_v35 = vcombine.low %v1528_v9, %v473_v32  ;;  %v1586_v47 = vld [vmem:[%s1518_s29 + $0xc] sm:$0xf]  ;;  %v882_v4 = vld [vmem:[%s1518_s29 + $0x10] sm:$0x7] }
  0x15   : > { %v211_v17 = vshll.u32 %v1536_v13, 16  ;;  %v215_v18 = vshrl.u32 %v1536_v13, 16  ;;  %1315 = vmatprep.subr.bf16.mxu0 %v1420_v16  ;;  %1327 = vmatprep.subr.bf16.mxu1 %v1421_v20  ;;  %v389_v30 = vrot.slane %v1536_v13, 1  ;;  %v388_v37 = vrot.slane %v1182_v29, 1  ;;  %v777_v2 = vld [vmem:[%s1518_s29 + $0xc] sm:$0xf] }
  0x16   : > { %v208_v19 = vrot.slane %v206_v15, 1  ;;  %v489_v38 = vrot.slane %v1189_v34, 3  ;;  %v490_v39 = vrot.slane %v1190_v35, 3  ;;  %v587_v41 = vshrl.u32 %v1189_v34, 16  ;;  %v778_v6 = vld [vmem:[%s1518_s29 + $0x10] sm:$0x3] }
  0x17   : > { %v213_v21 = vrot.slane %v211_v17, 1  ;;  %1312 = vmatmul.mubr.msk.bf16.vlgmr.msra.gmra.mrb[0].mxu1 %vm242_vm0, %v1175_v23  ;;  %v390_v40 = vsel %vm387_vm2, %v388_v37, %v389_v30  ;;  %v590_v44 = vshll.u32 %v1189_v34, 16  ;;  %v1197_v50 = vcombine.low %v1528_v9, %v1586_v47  ;;  %v1437_v11 = vld [vmem:[%s1690_s1 + $0x98] sm:$0xff]   ;;  %v1446_v29 = vld [vmem:[%s1690_s1 + $0xd0] sm:$0xff]   ;;  %v993_v31 = vld [vmem:[%s1518_s29 + $0x4] sm:$0x8] }
  0x18   : > { %v209_v22 = vor.u32 %v208_v19, %v204_v14  ;;  %1328 = vmatpush3.bf16.msra.mxu1 %v1421_v20  ;;  %v491_v43 = vsel %vm488_vm3, %v489_v38, %v490_v39  ;;  %v589_v48 = vrot.slane %v587_v41, 3  ;;  %v1212_v3 = vcombine.low %v775_v62, %v1611_v1  ;;  %v1438_v12 = vld [vmem:[%s1690_s1 + $0xb8] sm:$0xff]   ;;  %v1443_v19 = vld [vmem:[%s1690_s1 + $0xe0] sm:$0xff]   ;;  %v1454_v38 = vld [vmem:[%s1690_s1 + $0x108] sm:$0xff]  }
  0x19   : > { %v217_v24 = vor.u32 %v215_v18, %v213_v21  ;;  %1329 = vmatprep.subr.bf16.mxu1 %v1423_v27  ;;  %1335 = vmatprep.mubr.msk.bf16.mxu1 %vm242_vm0, %v491_v43  ;;  %v592_v49 = vrot.slane %v590_v44, 4  ;;  %v595_v52 = vshrl.u32 %v1197_v50, 16  ;;  %v598_v53 = vshll.u32 %v1197_v50, 16  ;;  %v1440_v18 = vld [vmem:[%s1690_s1 + $0xc0] sm:$0xff]   ;;  %v1448_v32 = vld [vmem:[%s1690_s1 + $0xd8] sm:$0xff]  }
  0x1a   : > { %v214_v26 = vsel %vm202_vm1, %v209_v22, %v213_v21  ;;  %v1618_v5 = vcombine.low %v777_v2, %v882_v4  ;;  %v896_v7 = vshrl.u32 %v1212_v3, 16  ;;  %v899_v8 = vshll.u32 %v1212_v3, 16  ;;  %v1453_v35 = vld [vmem:[%s1690_s1 + $0x100] sm:$0xff]   ;;  %v1456_v41 = vld [vmem:[%s1690_s1 + $0x118] sm:$0xff]  }
  0x1b   : > { %1299 = vmatprep.mubr.msk.bf16.mxu0 %vm242_vm0, %v214_v26  ;;  %v593_v56 = vor.u32 %v592_v49, %v589_v48  ;;  %v597_v57 = vrot.slane %v595_v52, 3  ;;  %v600_v58 = vrot.slane %v598_v53, 4  ;;  %v1213_v13 = vcombine.low %v777_v2, %v778_v6  ;;  %v1445_v26 = vld [vmem:[%s1690_s1 + $0xe8] sm:$0xff]  }
  0x1c   : > { %1300 = vmatmul.mubr.msk.bf16.vlgmr.msra.gmra.mrb[0].mxu0 %vm242_vm0, %v217_v24  ;;  %1330 = vmatpush3.bf16.msra.mxu1 %v1423_v27  ;;  %v904_v9 = vshrl.u32 %v1618_v5, 16  ;;  %v907_v10 = vshll.u32 %v1618_v5, 16  ;;  %v898_v14 = vrot.slane %v896_v7, 2  ;;  %v901_v15 = vrot.slane %v899_v8, 3 }
  0x1d   : > { %1316 = vmatpush3.bf16.msra.mxu0 %v1420_v16  ;;  %1331 = vmatprep.subr.bf16.mxu1 %v1425_v36  ;;  %v601_v59 = vor.u32 %v600_v58, %v597_v57  ;;  %v1205_v20 = vcombine.low %v1586_v47, %v1586_v47  ;;  %v798_v21 = vrot.slane %v1212_v3, 2  ;;  %v799_v22 = vrot.slane %v1213_v13, 2 }
  0x1e   : > { %1317 = vmatprep.subr.bf16.mxu0 %v1422_v25  ;;  %1323 = vmatprep.mubr.msk.bf16.mxu0 %vm242_vm0, %v390_v40  ;;  %v906_v16 = vrot.slane %v904_v9, 2  ;;  %v909_v17 = vrot.slane %v907_v10, 3  ;;  %v902_v23 = vor.u32 %v901_v15, %v898_v14  ;;  %v1227_v34 = vcombine.low %v993_v31, %v1611_v1  ;;  %v1455_v40 = vld [vmem:[%s1690_s1 + $0x110] sm:$0xff]  }
  0x1f   : > { %v602_v0 = vsel %vm585_vm4, %v593_v56, %v601_v59  ;;  %v800_v27 = vsel %vm797_vm5, %v798_v21, %v799_v22  ;;  %v1006_v37 = vrot.slane %v1618_v5, 3 }
  0x20   : > { %1332 = vmatpush3.bf16.msra.mxu1 %v1425_v36  ;;  %v910_v24 = vor.u32 %v909_v17, %v906_v16  ;;  %v1005_v36 = vrot.slane %v1227_v34, 3 }
  0x21   : > { %1318 = vmatpush3.bf16.msra.mxu0 %v1422_v25  ;;  %1333 = vmatprep.subr.bf16.mxu1 %v1427_v45  ;;  %v1444_v25 = vld [vmem:[%s1690_s1 + $0xc8] sm:$0xff]  }
  0x22   : > { %1319 = vmatprep.subr.bf16.mxu0 %v1424_v33  ;;  %v911_v28 = vsel %vm894_vm6, %v902_v23, %v910_v24 }
  0x24   : > { %1334 = vmatpush3.bf16.msra.mxu1 %v1427_v45 }
  0x25   : > { %1320 = vmatpush3.bf16.msra.mxu0 %v1424_v33  ;;  %1351 = vmatprep.subr.bf16.mxu1 %v1432_v51  ;;  %v1449_v33 = vld [vmem:[%s1690_s1 + $0xf8] sm:$0xff]  }
  0x26   : > { %1321 = vmatprep.subr.bf16.mxu0 %v1426_v42 }
  0x27   : > { %1336 = vmatmul.mubr.msk.bf16.vlgmr.msra.gmra.mrb[4].mxu1 %vm242_vm0, %v490_v39  ;;  %v1007_v39 = vsel %vm488_vm3, %v1005_v36, %v1006_v37 }
  0x28   : > { %1352 = vmatpush3.bf16.msra.mxu1 %v1432_v51  ;;  %1359 = vmatprep.mubr.msk.bf16.mxu1 %vm242_vm0, %v1204_v60 }
  0x29   : > { %1322 = vmatpush3.bf16.msra.mxu0 %v1426_v42  ;;  %1353 = vmatprep.subr.bf16.mxu1 %v1434_v55 }
  0x2a   : > { %1339 = vmatprep.subr.bf16.mxu0 %v1429_v46 }
  0x2c   : > { %1324 = vmatmul.mubr.msk.bf16.vlgmr.msra.gmra.mrb[4].mxu0 %vm242_vm0, %v389_v30  ;;  %1354 = vmatpush3.bf16.msra.mxu1 %v1434_v55  ;;  %v1447_v30 = vld [vmem:[%s1690_s1 + $0xf0] sm:$0xff]  }
  0x2d   : > { %1340 = vmatpush3.bf16.msra.mxu0 %v1429_v46  ;;  %1347 = vmatprep.mubr.msk.bf16.mxu0 %vm242_vm0, %v602_v0 }
  0x2e   : > { %1341 = vmatprep.subr.bf16.mxu0 %v1433_v54  ;;  %1355 = vmatprep.subr.bf16.mxu1 %v1436_v63 }
  0x30   : > { %1356 = vmatpush3.bf16.msra.mxu1 %v1436_v63 }
  0x31   : > { %1342 = vmatpush3.bf16.msra.mxu0 %v1433_v54  ;;  %1357 = vmatprep.subr.bf16.mxu1 %v1438_v12 }
  0x32   : > { %1343 = vmatprep.subr.bf16.mxu0 %v1435_v61 }
  0x34   : > { %1358 = vmatpush3.bf16.msra.mxu1 %v1438_v12 }
  0x35   : > { %1344 = vmatpush3.bf16.msra.mxu0 %v1435_v61  ;;  %1375 = vmatprep.subr.bf16.mxu1 %v1443_v19 }
  0x36   : > { %1345 = vmatprep.subr.bf16.mxu0 %v1437_v11 }
  0x37   : > { %1360 = vmatmul.mubr.msk.bf16.vlgmr.msra.gmra.mrb[8].mxu1 %vm242_vm0, %v1205_v20 }
  0x38   : > { %1376 = vmatpush3.bf16.msra.mxu1 %v1443_v19  ;;  %1383 = vmatprep.mubr.msk.bf16.mxu1 %vm242_vm0, %v911_v28 }
  0x39   : > { %1346 = vmatpush3.bf16.msra.mxu0 %v1437_v11  ;;  %1377 = vmatprep.subr.bf16.mxu1 %v1445_v26 }
  0x3a   : > { %1363 = vmatprep.subr.bf16.mxu0 %v1440_v18 }
  0x3c   : > { %1348 = vmatmul.mubr.msk.bf16.vlgmr.msra.gmra.mrb[8].mxu0 %vm242_vm0, %v601_v59  ;;  %1378 = vmatpush3.bf16.msra.mxu1 %v1445_v26 }
  0x3d   : > { %1364 = vmatpush3.bf16.msra.mxu0 %v1440_v18  ;;  %1371 = vmatprep.mubr.msk.bf16.mxu0 %vm242_vm0, %v800_v27 }
  0x3e   : > { %1365 = vmatprep.subr.bf16.mxu0 %v1444_v25  ;;  %1379 = vmatprep.subr.bf16.mxu1 %v1447_v30 }
  0x40   : > { %1380 = vmatpush3.bf16.msra.mxu1 %v1447_v30 }
  0x41   : > { %1366 = vmatpush3.bf16.msra.mxu0 %v1444_v25  ;;  %1381 = vmatprep.subr.bf16.mxu1 %v1449_v33 }
  0x42   : > { %1367 = vmatprep.subr.bf16.mxu0 %v1446_v29 }
  0x44   : > { %1382 = vmatpush3.bf16.msra.mxu1 %v1449_v33 }
  0x45   : > { %1368 = vmatpush3.bf16.msra.mxu0 %v1446_v29 }
  0x46   : > { %1369 = vmatprep.subr.bf16.mxu0 %v1448_v32 }
  0x47   : > { %1384 = vmatmul.mubr.msk.bf16.vlgmr.msra.gmra.mrb[12].mxu1 %vm242_vm0, %v910_v24 }
  0x49   : > { %1370 = vmatpush3.bf16.msra.mxu0 %v1448_v32  ;;  %v1234_v32 = vld [vmem:[%s1691_s2] ss:$0 sm:$0xff] }
  0x4a   : > { %1387 = vmatprep.subr.bf16.mxu0 %v1453_v35 }
  0x4c   : > { %1372 = vmatmul.mubr.msk.bf16.vlgmr.msra.gmra.mrb[12].mxu0 %vm242_vm0, %v799_v22 }
  0x4d   : > { %1388 = vmatpush3.bf16.msra.mxu0 %v1453_v35  ;;  %1395 = vmatprep.mubr.msk.bf16.mxu0 %vm242_vm0, %v1007_v39 }
  0x4e   : > { %1389 = vmatprep.subr.bf16.mxu0 %v1454_v38 }
  0x51   : > { %1390 = vmatpush3.bf16.msra.mxu0 %v1454_v38 }
  0x52   : > { %1391 = vmatprep.subr.bf16.mxu0 %v1455_v40 }
  0x55   : > { %1392 = vmatpush3.bf16.msra.mxu0 %v1455_v40 }
  0x56   : > { %1393 = vmatprep.subr.bf16.mxu0 %v1456_v41 }
  0x59   : > { %1394 = vmatpush3.bf16.msra.mxu0 %v1456_v41 }
  0x5c   : > { %1396 = vmatmul.mubr.msk.bf16.vlgmr.msra.gmra.mrb[16].mxu0 %vm242_vm0, %v1006_v37 }
  0xea   : > { %v1313_v43 = vpop.f32.mrb[0].mxu1 }
  0xeb   : > { %v361_v46 = vpop.f32.mrb[1].mxu1 }
  0xec   : > { %v1314_v49 = vpop.f32.mrb[2].mxu1 }
  0xed   : > { %v364_v51 = vpop.f32.mrb[3].mxu1 }
  0xef   : > { %v1301_v42 = vpop.f32.mrb[0].mxu0 }
  0xf0   : > { %v370_v44 = vadd.f32 %v1313_v43, %v1301_v42  ;;  %v283_v45 = vpop.f32.mrb[1].mxu0 }
  0xf1   : > { %v362_v47 = vadd.f32 %v361_v46, %v283_v45  ;;  %v1302_v48 = vpop.f32.mrb[2].mxu0 }
  0xf2   : > { %v286_v50 = vpop.f32.mrb[3].mxu0 }
  0xf3   : > { %v365_v52 = vadd.f32 %v364_v51, %v286_v50 }
  0xfa   : > { %v1337_v54 = vpop.f32.mrb[4].mxu1 }
  0xfb   : > { %v556_v57 = vpop.f32.mrb[5].mxu1 }
  0xfc   : > { %v1338_v60 = vpop.f32.mrb[6].mxu1 }
  0xfd   : > { %v559_v63 = vpop.f32.mrb[7].mxu1 }
  0xff   : > { %v1325_v53 = vpop.f32.mrb[4].mxu0 }
 0x100   : > { %v471_v55 = vadd.f32 %v1325_v53, %v370_v44  ;;  %v455_v56 = vpop.f32.mrb[5].mxu0 }
 0x101   : > { %v469_v58 = vadd.f32 %v455_v56, %v362_v47  ;;  %v1326_v59 = vpop.f32.mrb[6].mxu0 }
 0x102   : > { %v572_v61 = vadd.f32 %v1337_v54, %v471_v55  ;;  %v458_v62 = vpop.f32.mrb[7].mxu0 }
 0x103   : > { %v470_v0 = vadd.f32 %v458_v62, %v365_v52  ;;  %v570_v1 = vadd.f32 %v556_v57, %v469_v58 }
 0x105   : > { %v571_v2 = vadd.f32 %v559_v63, %v470_v0 }
 0x10a   : > { %v1361_v4 = vpop.f32.mrb[8].mxu1 }
 0x10b   : > { %v758_v7 = vpop.f32.mrb[9].mxu1 }
 0x10c   : > { %v1362_v10 = vpop.f32.mrb[10].mxu1 }
 0x10d   : > { %v761_v13 = vpop.f32.mrb[11].mxu1 }
 0x10f   : > { %v1349_v3 = vpop.f32.mrb[8].mxu0 }
 0x110   : > { %v683_v5 = vadd.f32 %v1349_v3, %v572_v61  ;;  %v667_v6 = vpop.f32.mrb[9].mxu0 }
 0x111   : > { %v681_v8 = vadd.f32 %v667_v6, %v570_v1  ;;  %v1350_v9 = vpop.f32.mrb[10].mxu0 }
 0x112   : > { %v774_v11 = vadd.f32 %v1361_v4, %v683_v5  ;;  %v670_v12 = vpop.f32.mrb[11].mxu0 }
 0x113   : > { %v682_v14 = vadd.f32 %v670_v12, %v571_v2  ;;  %v772_v15 = vadd.f32 %v758_v7, %v681_v8 }
 0x115   : > { %v773_v16 = vadd.f32 %v761_v13, %v682_v14 }
 0x11a   : > { %v1385_v18 = vpop.f32.mrb[12].mxu1 }
 0x11b   : > { %v976_v21 = vpop.f32.mrb[13].mxu1 }
 0x11c   : > { %v1386_v24 = vpop.f32.mrb[14].mxu1 }
 0x11d   : > { %v979_v27 = vpop.f32.mrb[15].mxu1 }
 0x11f   : > { %v1373_v17 = vpop.f32.mrb[12].mxu0 }
 0x120   : > { %v881_v19 = vadd.f32 %v1373_v17, %v774_v11  ;;  %v865_v20 = vpop.f32.mrb[13].mxu0 }
 0x121   : > { %v879_v22 = vadd.f32 %v865_v20, %v772_v15  ;;  %v1374_v23 = vpop.f32.mrb[14].mxu0 }
 0x122   : > { %v992_v25 = vadd.f32 %v1385_v18, %v881_v19  ;;  %v868_v26 = vpop.f32.mrb[15].mxu0 }
 0x123   : > { %v880_v28 = vadd.f32 %v868_v26, %v773_v16  ;;  %v990_v29 = vadd.f32 %v976_v21, %v879_v22 }
 0x125   : > { %v991_v30 = vadd.f32 %v979_v27, %v880_v28 }
 0x12f   : > { %v1397_v31 = vpop.f32.mrb[16].mxu0 }
 0x130   : > { %v1088_v33 = vadd.f32 %v1397_v31, %v992_v25  ;;  %v1072_v34 = vpop.f32.mrb[17].mxu0 }
 0x131   : > { %v1086_v35 = vadd.f32 %v1072_v34, %v990_v29  ;;  %v1398_v36 = vpop.f32.mrb[18].mxu0 }
 0x132   : > { %v1098_v37 = vadd.f32 %v1234_v32, %v1088_v33  ;;  %v1075_v38 = vpop.f32.mrb[19].mxu0 }
 0x133   : > { %v1096_v39 = vadd.f32 %v1234_v32, %v1086_v35  ;;  %v1087_v40 = vadd.f32 %v1075_v38, %v991_v30 }
 0x134   : > { %v1101_v41 = vmax.f32 %v1098_v37, 0.0 }
 0x135   : > { %v1099_v42 = vmax.f32 %v1096_v39, 0.0  ;;  %v1097_v43 = vadd.f32 %v1234_v32, %v1087_v40 }
 0x136   : > { %1104 = vst [vmem:[%s170_s21 + $0x10] sm:$0xff] %v1101_v41 }
 0x137   : > { %1102 = vst [vmem:[%s170_s21] sm:$0xff] %v1099_v42  ;;  %v1100_v44 = vmax.f32 %v1097_v43, 0.0 }
 0x139   : > { %1103 = vst [vmem:[%s170_s21 + $0x8] sm:$0xff] %v1100_v44 }
 0x13a PF: > { %s13_s12 = sadd.s32 1, %s1464_s12  }
 0x13b   : > { %p10_p4 = scmp.ge.s32.totalorder %s13_s12, 4  }
 0x13d   :  { %12 = sbr.rel (!%p10_p4) target bundleno = 1 (0x1), region = 62 }

</bundles_post_ra>
